<compile_context>
chip_gen: v6e
topology: v6e:2x2x1
jax: 0.10.0
libtpu: 0.0.40
codegen_flags: <defaults>
</compile_context>

<pallas_src>
import math

import jax
import jax.numpy as jnp
from jax import lax
from jax.experimental import pallas as pl
from jax.experimental.pallas import tpu as pltpu


def _sincos_kernel(x_ref, w_ref, ph_ref, o_ref):
    # x_ref : (tile_m, k)      f32   k flattened x values per packed output row
    # w_ref : (k, out_w)       f32   block-diagonal expansion matrix, freqs baked in
    # ph_ref: (1, out_w)       f32   phase (0 for sin half, pi/2 for cos half), tiled
    # o_ref : (tile_m, out_w)  f32   lane-dense (out_w is a multiple of 128, or = dim)
    s = lax.dot_general(
        x_ref[...], w_ref[...],
        dimension_numbers=(((1,), (0,)), ((), ())),
        preferred_element_type=jnp.float32,
        precision=lax.Precision.HIGHEST,   # keep x*freq exact in f32 (load-bearing)
    )
    o_ref[...] = jnp.sin(s + ph_ref[...])


def _default_tiling():
    """Pick (target_block_bytes, vmem_limit_bytes) per chip generation."""
    try:
        vmem = pltpu.get_tpu_info().vmem_capacity_bytes
    except Exception:
        vmem = None
    if vmem is not None and vmem <= (64 << 20):
        # v7x-class: 64 MiB VMEM (32 MiB scoped default) but fastest HBM.
        return 4 << 20, 40 << 20
    # v5e / v6e: 128 MiB VMEM, go bigger.
    return 6 << 20, 64 << 20


def sincos_positional_encoding(x, dim, *, target_block_bytes=None,
                               vmem_limit_bytes=None):
    """Pallas equivalent of SinCosPositionalEncoding(dim).forward(x)."""
    assert dim % 2 == 0, "dim must be even"
    half = dim // 2

    if target_block_bytes is None or vmem_limit_bytes is None:
        tb, vl = _default_tiling()
        target_block_bytes = target_block_bytes or tb
        vmem_limit_bytes = vmem_limit_bytes or vl

    # Same parameter formula as the PyTorch module.
    inv_freq = 1.0 / (10000.0 ** (jnp.arange(0, dim, 2, dtype=jnp.float32) / dim))
    freq_full = jnp.concatenate([inv_freq, inv_freq])                       # (dim,)
    phase_full = jnp.concatenate(
        [jnp.zeros((half,), jnp.float32),
         jnp.full((half,), jnp.pi / 2, dtype=jnp.float32)])                 # (dim,)

    shape = x.shape
    x_flat = x.reshape(-1).astype(jnp.float32)
    n = x_flat.shape[0]

    # Lane-packing factor: k*dim is always a multiple of 128 (lane-dense stores).
    k = 128 // math.gcd(dim, 128)
    out_w = k * dim

    m = -(-n // k)                    # packed rows (ceil)
    n_pad = m * k
    if n_pad != n:
        x_flat = jnp.pad(x_flat, (0, n_pad - n))
    x_in = x_flat.reshape(m, k)       # free row-major view of x_flat

    # ---- block sizing -------------------------------------------------------
    out_row_bytes = out_w * 4
    in_row_bytes_padded = 128 * 4     # (tile_m, k) window is lane-padded to 128
    # Double-buffered W + phase constants (sublane-padded to 8).
    const_bytes = 2 * ((max(k, 8) * out_w + 8 * out_w) * 4)
    vmem_budget = max(1 << 20, vmem_limit_bytes - const_bytes - (4 << 20))
    tile_m_by_vmem = vmem_budget // (2 * (out_row_bytes + in_row_bytes_padded))
    tile_m_by_target = target_block_bytes // out_row_bytes
    tile_m = max(8, (min(tile_m_by_vmem, tile_m_by_target) // 8) * 8)
    # Keep at least 2 grid steps when possible so v7x's 2 TensorCores both work.
    half_m = ((-(-m // 2)) + 7) // 8 * 8
    m_up = ((m + 7) // 8) * 8
    tile_m = min(tile_m, max(8, half_m), m_up)
    grid = (pl.cdiv(m, tile_m),)

    # Expansion matrix: W[j, l] = freq_full[l % dim] if l // dim == j else 0.
    w = jnp.kron(jnp.eye(k, dtype=jnp.float32), freq_full.reshape(1, dim))  # (k, out_w)
    ph = jnp.tile(phase_full, k).reshape(1, out_w)

    out_packed = pl.pallas_call(
        _sincos_kernel,
        out_shape=jax.ShapeDtypeStruct((m, out_w), jnp.float32),
        grid_spec=pltpu.PrefetchScalarGridSpec(
            num_scalar_prefetch=0,
            grid=grid,
            in_specs=[
                pl.BlockSpec((tile_m, k), lambda i: (i, 0)),
                pl.BlockSpec((k, out_w), lambda i: (0, 0)),
                pl.BlockSpec((1, out_w), lambda i: (0, 0)),
            ],
            out_specs=pl.BlockSpec((tile_m, out_w), lambda i: (i, 0)),
        ),
        compiler_params=pltpu.CompilerParams(
            dimension_semantics=("parallel",),
            vmem_limit_bytes=vmem_limit_bytes),
    )(x_in, w, ph)

    # Pure row-major reinterpretation back to (n_pad, dim); drop padded rows.
    out = out_packed.reshape(n_pad, dim)
    if n_pad != n:
        out = out[:n]
    return out.reshape(*shape, dim)


def _reference(x, dim):
    inv_freq = 1.0 / (10000.0 ** (jnp.arange(0, dim, 2, dtype=jnp.float32) / dim))
    xf = x.reshape(-1).astype(jnp.float32)
    s = jnp.outer(xf, inv_freq)
    pe = jnp.concatenate([jnp.sin(s), jnp.cos(s)], axis=-1)
    return pe.reshape(*x.shape, dim)


if __name__ == "__main__":
    key = jax.random.PRNGKey(0)
    k1, k2, k3 = jax.random.split(key, 3)

    # Main case (as used inside SPADE): NCHW-like input, dim=32 -> k=4 lane packing.
    x = jax.random.normal(k1, (2, 4, 8, 8), dtype=jnp.float32) * 10.0
    dim = 32
    out = jax.block_until_ready(sincos_positional_encoding(x, dim))
    ref = _reference(x, dim)
    assert out.shape == (2, 4, 8, 8, dim)
    assert jnp.allclose(out, ref, atol=2e-5, rtol=2e-5)

    # dim >= 128 (k=1) path; non-multiple-of-8 N exercises the masked partial block.
    x2 = jax.random.normal(k2, (3, 5, 7), dtype=jnp.float32) * 5.0
    dim2 = 256
    out2 = jax.block_until_ready(sincos_positional_encoding(x2, dim2))
    ref2 = _reference(x2, dim2)
    assert out2.shape == (3, 5, 7, dim2)
    assert jnp.allclose(out2, ref2, atol=2e-5, rtol=2e-5)

    # Generalized packing: dim=48 -> k=8, and n % k != 0 exercises pad + slice.
    x3 = jax.random.normal(k3, (3, 5, 7), dtype=jnp.float32) * 5.0
    dim3 = 48
    out3 = jax.block_until_ready(sincos_positional_encoding(x3, dim3))
    ref3 = _reference(x3, dim3)
    assert out3.shape == (3, 5, 7, dim3)
    assert jnp.allclose(out3, ref3, atol=2e-5, rtol=2e-5)

    print("KERNEL_OK")
</pallas_src>

<mosaic_0001>
module attributes {stable_mosaic.version = 11 : i64} {
  func.func @_sincos_kernel(%arg0: i32, %arg1: memref<64x4xf32, #tpu.memory_space<vmem>>, %arg2: memref<4x128xf32, #tpu.memory_space<vmem>>, %arg3: memref<1x128xf32, #tpu.memory_space<vmem>>, %arg4: memref<64x128xf32, #tpu.memory_space<vmem>>) attributes {dimension_semantics = [#tpu.dimension_semantics<parallel>], iteration_bounds = array<i64: 2>, scalar_prefetch = 0 : i64, scratch_operands = 0 : i64, tpu.core_type = #tpu.core_type<tc>, window_params = [{transform_indices = @transform_0, window_bounds = array<i64: 64, 4>}, {pipeline_mode = #tpu.pipeline_mode<synchronous>, transform_indices = @transform_1, window_bounds = array<i64: 4, 128>}, {pipeline_mode = #tpu.pipeline_mode<synchronous>, transform_indices = @transform_2, window_bounds = array<i64: 1, 128>}, {transform_indices = @transform_3, window_bounds = array<i64: 64, 128>}]} {
    %c0 = arith.constant 0 : index
    %c0_0 = arith.constant 0 : index
    %0 = vector.load %arg1[%c0, %c0_0] : memref<64x4xf32, #tpu.memory_space<vmem>>, vector<64x4xf32>
    %c0_1 = arith.constant 0 : index
    %c0_2 = arith.constant 0 : index
    %1 = vector.load %arg2[%c0_1, %c0_2] : memref<4x128xf32, #tpu.memory_space<vmem>>, vector<4x128xf32>
    %cst = arith.constant dense<0.000000e+00> : vector<64x128xf32>
    %2 = tpu.matmul %0, %1, %cst {dimension_numbers = #tpu.dot_dimension_numbers<[1], [0], [0], [1], [0, 0, 1, 1], [], []>, precision = #tpu.contract_precision<fp32>} : vector<64x4xf32>, vector<4x128xf32>, vector<64x128xf32> -> vector<64x128xf32>
    %c0_3 = arith.constant 0 : index
    %c0_4 = arith.constant 0 : index
    %3 = vector.load %arg3[%c0_3, %c0_4] : memref<1x128xf32, #tpu.memory_space<vmem>>, vector<1x128xf32>
    %4 = vector.broadcast %3 : vector<1x128xf32> to vector<64x128xf32>
    %5 = arith.addf %2, %4 : vector<64x128xf32>
    %6 = math.sin %5 : vector<64x128xf32>
    %c0_5 = arith.constant 0 : index
    %c0_6 = arith.constant 0 : index
    %7 = vector.load %arg4[%c0_5, %c0_6] : memref<64x128xf32, #tpu.memory_space<vmem>>, vector<64x128xf32>
    tpu.vector_store %arg4[%c0_5, %c0_6], %6 {strides = array<i32>} : memref<64x128xf32, #tpu.memory_space<vmem>>, vector<64x128xf32>,
    return
  }
  func.func @transform_0(%arg0: i32) -> (i32, i32) {
    %c0_i32 = arith.constant 0 : i32
    %c0_i32_0 = arith.constant 0 : i32
    return %arg0, %c0_i32 : i32, i32
  }
  func.func @transform_1(%arg0: i32) -> (i32, i32) {
    %c0_i32 = arith.constant 0 : i32
    %c0_i32_0 = arith.constant 0 : i32
    %c0_i32_1 = arith.constant 0 : i32
    return %c0_i32, %c0_i32_0 : i32, i32
  }
  func.func @transform_2(%arg0: i32) -> (i32, i32) {
    %c0_i32 = arith.constant 0 : i32
    %c0_i32_0 = arith.constant 0 : i32
    %c0_i32_1 = arith.constant 0 : i32
    return %c0_i32, %c0_i32_0 : i32, i32
  }
  func.func @transform_3(%arg0: i32) -> (i32, i32) {
    %c0_i32 = arith.constant 0 : i32
    %c0_i32_0 = arith.constant 0 : i32
    return %arg0, %c0_i32 : i32, i32
  }
}

</mosaic_0001>

<bundles_post_ra>
// kernel: tpu_custom_call.1
= control target key start
LH: loop header
LB: loop body
LE: loop exit
PB: predicated region body
PF: predicated region fallthrough
CT: control target
= control target key end

     0   :  { %8 = vsyncpa [#allocation3], 0  ;;  %s3057_s0 = inlined_call_operand.vmem [shape: f32[128,4], index: 0, kind: input, shape index: {}]   ;;  %s3058_s1 = inlined_call_operand.vmem [shape: f32[4,128], index: 1, kind: input, shape index: {}]   ;;  %s3059_s2 = inlined_call_operand.vmem [shape: f32[1,128], index: 2, kind: input, shape index: {}]   ;;  %s3060_s3 = inlined_call_operand.hbm [shape: f32[128,128], index: 3, kind: output, shape index: {}]  }
   0x1   :  { %10 = vsyncpa [#allocation3 + $0x1], 0  ;;  %s2266_s12 = smov 0   ;;  %s2268_s13 = smov 0  }
   0x2   :  { %s2270_s14 = smov 0   ;;  %s2272_s15 = smov 0  }
   0x3 LB: > { %s2287_s16 = sadd.s32 4294967295, %s2235_s15   ;;  %s1880_s17 = sadd.s32 4294967294, %s2235_s15   ;;  %s2235_s15 = sphi %s2272_s15, %s3078_s15   ;;  %s2231_s14 = sphi %s2270_s14, %s3077_s14   ;;  %s2227_s13 = sphi %s2268_s13, %s3076_s13   ;;  %s2223_s12 = sphi %s2266_s12, %s3075_s12  }
   0x4   : > { %s2291_s18 = sadd.s32 1, %s2235_s15   ;;  %s91_s19 = sadd.s32 1, %s2231_s14 }
   0x5   : > { %s88_s20 = ssub.s32 %s2235_s15, %s2291_s18  ;;  %p101_p0 = scmp.ne.s32.totalorder %s2231_s14, %s2227_s13 }
   0x6   : > { %p89_p1 = scmp.eq.s32.totalorder %s88_s20, 0  ;;  %p102_p2 = scmp.eq.s32.totalorder %s2287_s16, 1 }
   0x7   : > { %p107_p3 = scmp.ne.s32.totalorder %s2227_s13, %s2223_s12  ;;  %p108_p4 = scmp.eq.s32.totalorder %s1880_s17, 1 }
   0x8   : > { %s2302_s21 = scalar_select %p89_p1, %s2231_s14, %s91_s19  }
   0x9   : > { %p2304_p5 = por %p102_p2, %p101_p0  ;;  %p2308_p6 = por %p108_p4, %p107_p3 }
   0xa   : > { %p1883_p7 = scmp.ge.s32.totalorder %s2235_s15, 1  ;;  %p141_p8 = scmp.lt.s32.totalorder %s2235_s15, 3 }
   0xc   : > { %p142_p9 = pnand %p1883_p7, %p141_p8 }
   0xd   : > { %s1885_s26 = sshll.u32 (!%p142_p9), %s2287_s16, 3  ;;  %s162_s6 = sand.u32 (!%p142_p9), 1, %s2227_s13  }
   0xe   : > { %145 = sbr.rel (%p142_p9) target bundleno = 520 (0x208), region = 32  ;;  %p166_p10 = scmp.lt.s32.totalorder (!%p142_p9), %s1885_s26, 15 }
   0xf   : > { %s1884_s7 = sshll.u32 (!%p142_p9), %s162_s6, 6  ;;  %s1925_s9 = sshll.u32 (!%p142_p9), %s2287_s16, 10 }
  0x10   : > { %s2702_s8 = scalar_lea.vmem (!%p142_p9), [#allocation2], %s1884_s7  ;;  %s3009_s19 = scalar_lea.hbm (!%p142_p9), %s3060_s3, %s1925_s9 }
  0x11   : > { %s1818_s10 = sshll.u32 (!%p142_p9), %s2702_s8, 4  ;;  %s3017_s16 = scalar_lea.sflag (!%p142_p9), [#allocation3], %s162_s6  ;;  %s3011_s10 = int_to_ptr.vmem [resolvable:$true] %s1818_s10 }
  0x12   : > { %s2175_s20 = scalar_lea.vmem (!%p142_p9), %s3011_s10, 1024  ;;  %s2243_s24 = smov (!%p142_p9), [#allocation2]  }
  0x13   : > { %v180_v0 = vld [vmem:[%s3058_s1] sm:$0xf]  ;;  %vm213_vm0 = vcmask 1043456   ;;  %s3080_s26 = smov (!%p166_p10, %s1885_s26), 15  ;;  %vm188_vm1 = vcmask 31744   ;;  %p2176_p11 = scmp.ne.s32.totalorder %s3011_s10, %s2175_s20 }
  0x14   : > { %v215_v1 = vsel %vm213_vm0, %v180_v0, 0  ;;  %s1886_s27 = sshll.u32 %s3080_s26, 3  ;;  %s2179_s25 = sshll.u32 %s2243_s24, 4  ;;  %s2180_s25 = int_to_ptr.vmem [resolvable:$false] %s2179_s25 }
  0x15   : > { %v2318_v2 = vand.u32 4294901760, %v215_v1  ;;  %s169_s30 = scalar_lea.vmem %s3057_s0, %s1886_s27  ;;  %p2177_p12 = pnand %p2176_p11, %p2304_p5 }
  0x16   : > { %v172_v5 = vld [vmem:[%s169_s30] sm:$0xff]  ;;  %v173_v6 = vld [vmem:[%s169_s30 + $0x8] sm:$0xff]  ;;  %v174_v7 = vld [vmem:[%s169_s30 + $0x10] sm:$0xff]  ;;  %s2181_s26 = scalar_lea.vmem %s2180_s25, 2048  ;;  %p2182_p0 = scmp.lt.s32.totalorder %s3011_s10, %s2180_s25 }
  0x17   : > { %1980 = vmatprep.subr.mxu0 %v2318_v2  ;;  %v2322_v3 = vsub.f32 %v215_v1, %v2318_v2  ;;  %v190_v9 = vsel %vm188_vm1, %v172_v5, 0  ;;  %v193_v10 = vsel %vm188_vm1, %v173_v6, 0  ;;  %v196_v11 = vsel %vm188_vm1, %v174_v7, 0  ;;  %v175_v12 = vld [vmem:[%s169_s30 + $0x18] sm:$0xff]  ;;  %v176_v13 = vld [vmem:[%s169_s30 + $0x20] sm:$0xff]  ;;  %v177_v14 = vld [vmem:[%s169_s30 + $0x28] sm:$0xff]  ;;  %p2178_p13 = pneg %p2177_p12  ;;  %p2183_p1 = scmp.lt.s32.totalorder %s2181_s26, %s2175_s20 }
  0x18   : > { %1981 = vmatpush3.msra.mxu0 %v2318_v2  ;;  %v2337_v15 = vand.u32 4294901760, %v190_v9  ;;  %v2339_v16 = vand.u32 4294901760, %v193_v10  ;;  %v2341_v17 = vand.u32 4294901760, %v196_v11  ;;  %v199_v18 = vsel %vm188_vm1, %v175_v12, 0  ;;  %v178_v19 = vld [vmem:[%s169_s30 + $0x30] sm:$0xff]  ;;  %v179_v20 = vld [vmem:[%s169_s30 + $0x38] sm:$0xff] }
  0x19   : > { %v2326_v4 = vand.u32 4294901760, %v2322_v3  ;;  %2008 = vmatprep.subr.mxu0 %v2322_v3  ;;  %v2344_v22 = vand.u32 4294901760, %v199_v18  ;;  %v202_v23 = vsel %vm188_vm1, %v176_v13, 0  ;;  %v205_v24 = vsel %vm188_vm1, %v177_v14, 0  ;;  %p2184_p2 = por %p2183_p1, %p2182_p0 }
  0x1a   : > { %v2349_v25 = vsub.f32 %v190_v9, %v2337_v15  ;;  %1996 = vmatprep.mubr.f32.mxu1 %v2337_v15  ;;  %v2353_v26 = vsub.f32 %v193_v10, %v2339_v16  ;;  %v2356_v27 = vsub.f32 %v196_v11, %v2341_v17  ;;  %v2358_v28 = vand.u32 4294901760, %v202_v23 }
  0x1b   : > { %v397_v8 = vsub.f32 %v2322_v3, %v2326_v4  ;;  %v2361_v29 = vsub.f32 %v199_v18, %v2344_v22  ;;  %v2363_v30 = vand.u32 4294901760, %v205_v24  ;;  %v208_v31 = vsel %vm188_vm1, %v178_v19, 0  ;;  %p2185_p3 = pnand %p2184_p2, %p2178_p13 }
  0x1c   : > { %v211_v32 = vsel %vm188_vm1, %v179_v20, 0  ;;  %v285_v33 = vand.u32 4294901760, %v2349_v25  ;;  %v295_v34 = vand.u32 4294901760, %v2353_v26  ;;  %v305_v35 = vand.u32 4294901760, %v2356_v27 }
  0x1d   : > { %v398_v21 = vand.u32 4294901760, %v397_v8  ;;  %v324_v36 = vsub.f32 %v202_v23, %v2358_v28  ;;  %v315_v37 = vand.u32 4294901760, %v2361_v29  ;;  %v334_v38 = vsub.f32 %v205_v24, %v2363_v30  ;;  %v1887_v8 = vld [vmem:[%s3059_s2] ss:$0 sm:$0xff] }
  0x1e   : > { %v2375_v39 = vand.u32 4294901760, %v208_v31  ;;  %v2377_v40 = vand.u32 4294901760, %v211_v32  ;;  %v286_v41 = vsub.f32 %v2349_v25, %v285_v33  ;;  %v296_v42 = vsub.f32 %v2353_v26, %v295_v34 }
  0x1f   : > { %1994 = vmatprep.subr.mxu1 %v398_v21  ;;  %v306_v43 = vsub.f32 %v2356_v27, %v305_v35  ;;  %v325_v44 = vand.u32 4294901760, %v324_v36  ;;  %v316_v45 = vsub.f32 %v2361_v29, %v315_v37  ;;  %v335_v46 = vand.u32 4294901760, %v334_v38 }
  0x20   : > { %1995 = vmatpush3.msra.mxu1 %v398_v21  ;;  %v344_v47 = vsub.f32 %v208_v31, %v2375_v39  ;;  %v354_v48 = vsub.f32 %v211_v32, %v2377_v40  ;;  %v287_v49 = vand.u32 4294901760, %v286_v41  ;;  %v297_v50 = vand.u32 4294901760, %v296_v42 }
  0x21   : > { %1997 = vmatmul.mubr.f32.vlgmr.msra.gmra.mxu1 %v2339_v16  ;;  %2022 = vmatprep.subr.mxu1 %v2318_v2  ;;  %v307_v51 = vand.u32 4294901760, %v306_v43  ;;  %v326_v52 = vsub.f32 %v324_v36, %v325_v44  ;;  %v317_v54 = vand.u32 4294901760, %v316_v45  ;;  %v336_v55 = vsub.f32 %v334_v38, %v335_v46 }
  0x22   : > { %2023 = vmatpush3.msra.mxu1 %v2318_v2  ;;  %1999 = vmatprep.mubr.f32.mxu1 %v2341_v17  ;;  %v345_v53 = vand.u32 4294901760, %v344_v47  ;;  %v355_v56 = vand.u32 4294901760, %v354_v48 }
  0x23   : > { %2050 = vmatprep.subr.mxu1 %v2318_v2  ;;  %1982 = vmatprep.mubr.f32.mxu0 %v287_v49  ;;  %v327_v57 = vand.u32 4294901760, %v326_v52  ;;  %v337_v59 = vand.u32 4294901760, %v336_v55 }
  0x24   : > { %1983 = vmatmul.mubr.f32.vlgmr.msra.gmra.mxu0 %v297_v50  ;;  %v346_v58 = vsub.f32 %v344_v47, %v345_v53  ;;  %v356_v60 = vsub.f32 %v354_v48, %v355_v56 }
  0x25   : > { %2000 = vmatmul.mubr.f32.gmra.mxu1 %v2344_v22  ;;  %2009 = vmatpush3.msra.mxu0 %v2322_v3 }
  0x26   : > { %2002 = vmatprep.mubr.f32.mxu1 %v2358_v28  ;;  %1985 = vmatprep.mubr.f32.mxu0 %v307_v51  ;;  %v347_v61 = vand.u32 4294901760, %v346_v58  ;;  %v357_v62 = vand.u32 4294901760, %v356_v60 }
  0x27   : > { %2036 = vmatprep.subr.mxu0 %v2326_v4 }
  0x28   : > { %1986 = vmatmul.mubr.f32.gmra.mxu0 %v317_v54 }
  0x29   : > { %2003 = vmatmul.mubr.f32.gmra.mxu1 %v2363_v30  ;;  %1988 = vmatprep.mubr.f32.mxu0 %v327_v57 }
  0x2a   : > { %2005 = vmatprep.mubr.f32.mxu1 %v2375_v39 }
  0x2c   : > { %1989 = vmatmul.mubr.f32.gmra.mxu0 %v337_v59 }
  0x2d   : > { %2006 = vmatmul.mubr.f32.gmra.mxu1 %v2377_v40  ;;  %1991 = vmatprep.mubr.f32.mxu0 %v347_v61 }
  0x2e   : > { %2024 = vmatprep.mubr.f32.mxu1 %v285_v33 }
  0x30   : > { %1992 = vmatmul.mubr.f32.gmra.mxu0 %v357_v62 }
  0x31   : > { %2025 = vmatmul.mubr.f32.vlgmr.msra.gmra.mxu1 %v295_v34  ;;  %2010 = vmatprep.mubr.f32.mxu0 %v2349_v25 }
  0x32   : > { %2051 = vmatpush3.msra.mxu1 %v2318_v2  ;;  %2027 = vmatprep.mubr.f32.mxu1 %v305_v35 }
  0x34   : > { %2011 = vmatmul.mubr.f32.vlgmr.msra.gmra.mxu0 %v2353_v26 }
  0x35   : > { %2028 = vmatmul.mubr.f32.gmra.mxu1 %v315_v37  ;;  %2037 = vmatpush3.msra.mxu0 %v2326_v4 }
  0x36   : > { %2030 = vmatprep.mubr.f32.mxu1 %v325_v44  ;;  %2013 = vmatprep.mubr.f32.mxu0 %v2356_v27 }
  0x38   : > { %2014 = vmatmul.mubr.f32.gmra.mxu0 %v2361_v29 }
  0x39   : > { %2031 = vmatmul.mubr.f32.gmra.mxu1 %v335_v46  ;;  %2016 = vmatprep.mubr.f32.mxu0 %v324_v36 }
  0x3a   : > { %2033 = vmatprep.mubr.f32.mxu1 %v345_v53 }
  0x3c   : > { %2017 = vmatmul.mubr.f32.gmra.mxu0 %v334_v38 }
  0x3d   : > { %2034 = vmatmul.mubr.f32.gmra.mxu1 %v355_v56  ;;  %2019 = vmatprep.mubr.f32.mxu0 %v344_v47 }
  0x3e   : > { %2052 = vmatprep.mubr.f32.mxu1 %v2337_v15 }
  0x40   : > { %2020 = vmatmul.mubr.f32.gmra.mxu0 %v354_v48 }
  0x41   : > { %2053 = vmatmul.mubr.f32.vlgmr.msra.gmra.mxu1 %v2339_v16  ;;  %2038 = vmatprep.mubr.f32.mxu0 %v2337_v15 }
  0x42   : > { %2055 = vmatprep.mubr.f32.mxu1 %v2341_v17 }
  0x44   : > { %2039 = vmatmul.mubr.f32.vlgmr.msra.gmra.mxu0 %v2339_v16 }
  0x45   : > { %2056 = vmatmul.mubr.f32.gmra.mxu1 %v2344_v22  ;;  %2041 = vmatprep.mubr.f32.mxu0 %v2341_v17 }
  0x46   : > { %2058 = vmatprep.mubr.f32.mxu1 %v2358_v28 }
  0x48   : > { %2042 = vmatmul.mubr.f32.gmra.mxu0 %v2344_v22 }
  0x49   : > { %2059 = vmatmul.mubr.f32.gmra.mxu1 %v2363_v30  ;;  %2044 = vmatprep.mubr.f32.mxu0 %v2358_v28 }
  0x4a   : > { %2061 = vmatprep.mubr.f32.mxu1 %v2375_v39 }
  0x4c   : > { %2045 = vmatmul.mubr.f32.gmra.mxu0 %v2363_v30 }
  0x4d   : > { %2062 = vmatmul.mubr.f32.gmra.mxu1 %v2377_v40  ;;  %2047 = vmatprep.mubr.f32.mxu0 %v2375_v39 }
  0x50   : > { %2048 = vmatmul.mubr.f32.gmra.mxu0 %v2377_v40 }
  0xe1   : > { %v1998_v63 = vpop.f32.mrf.mxu1 }
  0xe3   : > { %v435_v0 = vpop.f32.mrf.mxu1 }
  0xe4   : > { %v1984_v2 = vpop.f32.mrf.mxu0 }
  0xe5   : > { %v2001_v1 = vpop.f32.mrf.mxu1  ;;  %v300_v35 = vadd.f32 %v1984_v2, %v1887_v8 }
  0xe6   : > { %v289_v4 = vpop.f32.mrf.mxu0 }
  0xe7   : > { %v447_v3 = vpop.f32.mrf.mxu1  ;;  %v290_v37 = vadd.f32 %v1887_v8, %v289_v4  ;;  %v442_v41 = vadd.f32 %v1998_v63, %v300_v35 }
  0xe8   : > { %v1987_v6 = vpop.f32.mrf.mxu0 }
  0xe9   : > { %v2004_v5 = vpop.f32.mrf.mxu1  ;;  %v320_v44 = vadd.f32 %v1987_v6, %v1887_v8  ;;  %v436_v46 = vadd.f32 %v435_v0, %v290_v37 }
  0xea   : > { %v309_v9 = vpop.f32.mrf.mxu0 }
  0xeb   : > { %v459_v7 = vpop.f32.mrf.mxu1  ;;  %v310_v11 = vadd.f32 %v1887_v8, %v309_v9  ;;  %v454_v55 = vadd.f32 %v2001_v1, %v320_v44  ;;  %v2240_v44 = vmov 2102212464  }
  0xec   : > { %v1990_v12 = vpop.f32.mrf.mxu0 }
  0xed   : > { %v2007_v10 = vpop.f32.mrf.mxu1  ;;  %v448_v14 = vadd.f32 %v447_v3, %v310_v11  ;;  %v340_v15 = vadd.f32 %v1990_v12, %v1887_v8 }
  0xee   : > { %v329_v16 = vpop.f32.mrf.mxu0 }
  0xef   : > { %v471_v13 = vpop.f32.mrf.mxu1  ;;  %v466_v18 = vadd.f32 %v2004_v5, %v340_v15  ;;  %v330_v19 = vadd.f32 %v1887_v8, %v329_v16 }
  0xf0   : > { %v1993_v20 = vpop.f32.mrf.mxu0 }
  0xf1   : > { %v2026_v17 = vpop.f32.mrf.mxu1  ;;  %v460_v22 = vadd.f32 %v459_v7, %v330_v19  ;;  %v360_v23 = vadd.f32 %v1993_v20, %v1887_v8 }
  0xf2   : > { %v349_v24 = vpop.f32.mrf.mxu0 }
  0xf3   : > { %v674_v21 = vpop.f32.mrf.mxu1  ;;  %v478_v26 = vadd.f32 %v2007_v10, %v360_v23  ;;  %v350_v27 = vadd.f32 %v1887_v8, %v349_v24 }
  0xf4   : > { %v2012_v28 = vpop.f32.mrf.mxu0 }
  0xf5   : > { %v2029_v25 = vpop.f32.mrf.mxu1  ;;  %v472_v30 = vadd.f32 %v471_v13, %v350_v27  ;;  %v559_v47 = vadd.f32 %v2012_v28, %v442_v41 }
  0xf6   : > { %v551_v31 = vpop.f32.mrf.mxu0 }
  0xf7   : > { %v690_v29 = vpop.f32.mrf.mxu1  ;;  %v552_v52 = vadd.f32 %v551_v31, %v436_v46  ;;  %v683_v57 = vadd.f32 %v2026_v17, %v559_v47  ;;  %v2241_v46 = vmov 920167782  }
  0xf8   : > { %v2015_v33 = vpop.f32.mrf.mxu0 }
  0xf9   : > { %v2032_v32 = vpop.f32.mrf.mxu1  ;;  %v573_v60 = vadd.f32 %v2015_v33, %v454_v55  ;;  %v675_v63 = vadd.f32 %v674_v21, %v552_v52  ;;  %v2242_v55 = vmov 1326507024  }
  0xfa   : > { %v565_v36 = vpop.f32.mrf.mxu0 }
  0xfb   : > { %v706_v34 = vpop.f32.mrf.mxu1  ;;  %v566_v38 = vadd.f32 %v565_v36, %v448_v14  ;;  %v699_v6 = vadd.f32 %v2029_v25, %v573_v60 }
  0xfc   : > { %v2018_v39 = vpop.f32.mrf.mxu0 }
  0xfd   : > { %v2035_v40 = vpop.f32.mrf.mxu1  ;;  %v691_v42 = vadd.f32 %v690_v29, %v566_v38  ;;  %v587_v43 = vadd.f32 %v2018_v39, %v466_v18  ;;  %v2237_v38 = vmov 683565275  }
  0xfe   : > { %v579_v45 = vpop.f32.mrf.mxu0 }
  0xff   : > { %v2420_v48 = vadd.f32 %v2032_v32, %v587_v43  ;;  %v580_v49 = vadd.f32 %v579_v45, %v460_v22  ;;  %v722_v51 = vpop.f32.mrf.mxu1 }
 0x100   : > { %v2021_v50 = vpop.f32.mrf.mxu0 }
 0x101   : > { %v2422_v53 = vadd.f32 %v706_v34, %v580_v49  ;;  %v601_v54 = vadd.f32 %v2021_v50, %v478_v26  ;;  %v2054_v62 = vpop.f32.mrf.mxu1 }
 0x102   : > { %v593_v56 = vpop.f32.mrf.mxu0 }
 0x103   : > { %v2424_v58 = vadd.f32 %v2035_v40, %v601_v54  ;;  %v594_v59 = vadd.f32 %v593_v56, %v472_v30  ;;  %v918_v7 = vpop.f32.mrf.mxu1  ;;  %v2238_v40 = vmov 2475754826  }
 0x104   : > { %v2040_v61 = vpop.f32.mrf.mxu0 }
 0x105   : > { %v2426_v0 = vadd.f32 %v722_v51, %v594_v59  ;;  %v811_v2 = vadd.f32 %v2040_v61, %v683_v57  ;;  %v2057_v16 = vpop.f32.mrf.mxu1 }
 0x106   : > { %v804_v3 = vpop.f32.mrf.mxu0 }
 0x107   : > { %v2428_v4 = vadd.f32 %v2054_v62, %v811_v2  ;;  %v805_v5 = vadd.f32 %v804_v3, %v675_v63  ;;  %v930_v32 = vpop.f32.mrf.mxu1 }
 0x108   : > { %v2043_v8 = vpop.f32.mrf.mxu0 }
 0x109   : > { %v1068_v1 = vand.u32 2147483647, %v2428_v4  ;;  %v1071_v9 = vand.u32 2139095040, %v2428_v4  ;;  %v2432_v10 = vadd.f32 %v918_v7, %v805_v5  ;;  %v823_v11 = vadd.f32 %v2043_v8, %v699_v6 }
 0x10a   : > { %v816_v17 = vpop.f32.mrf.mxu0  ;;  %vm1070_vm15 = vcmp.lt.s32.totalorder %v2428_v4, 0 }
 0x10b   : > { %v1072_v12 = vshrl.u32 %v1071_v9, 23  ;;  %v1075_v13 = vand.u32 8388607, %v1068_v1  ;;  %v964_v14 = vand.u32 2147483647, %v2432_v10  ;;  %v967_v15 = vand.u32 2139095040, %v2432_v10 }
 0x10c   : > { %v2438_v19 = vadd.f32 %v2057_v16, %v823_v11  ;;  %v817_v23 = vadd.f32 %v816_v17, %v691_v42  ;;  %v2239_v42 = vmov 2131351028   ;;  %vm2541_vm0 = vcmp.le.f32.partialorder %v1068_v1, 0.7853982 }
 0x10d   : > { %v1892_v18 = vadd.s32 4294967169, %v1072_v12  ;;  %v968_v20 = vshrl.u32 %v967_v15, 23  ;;  %v971_v21 = vand.u32 8388607, %v964_v14  ;;  %v1076_v24 = vor.u32 8388608, %v1075_v13 }
 0x10e   : > { %v1279_v27 = vand.u32 2139095040, %v2438_v19  ;;  %v2447_v36 = vadd.f32 %v930_v32, %v817_v23 }
 0x10f   : > { %v1078_v22 = vadd.s32 1, %v1892_v18  ;;  %v1888_v25 = vadd.s32 4294967169, %v968_v20  ;;  %v972_v26 = vor.u32 8388608, %v971_v21  ;;  %v2443_v33 = vshll.u32 %v1076_v24, 8 }
 0x110   : > { %v1280_v35 = vshrl.u32 %v1279_v27, 23 }
 0x111   : > { %vm1079_vm2 = vcmp.gt.s32.totalorder %v1078_v22, 0  ;;  %v974_v29 = vadd.s32 1, %v1888_v25  ;;  %v2445_v34 = vshll.u32 %v972_v26, 8 }
 0x112   : > { %v1080_v28 = vsel %vm1079_vm2, %v1078_v22, 0  ;;  %v1900_v17 = vadd.s32 4294967169, %v1280_v35 }
 0x113   : > { %v1081_v30 = vshrl.u32 %v1080_v28, 5  ;;  %v1082_v31 = vand.u32 31, %v1080_v28  ;;  %vm975_vm3 = vcmp.gt.s32.totalorder %v974_v29, 0 }
 0x114   : > { %v976_v61 = vsel %vm975_vm3, %v974_v29, 0 }
 0x115   : > { %v1083_v37 = vsub.s32 32, %v1082_v31  ;;  %v1085_v39 = vshll.u32 %v2237_v38, %v1082_v31  ;;  %v1088_v41 = vshll.u32 %v2238_v40, %v1082_v31  ;;  %v1091_v43 = vshll.u32 %v2239_v42, %v1082_v31 }
 0x116   : > { %v1094_v45 = vshll.u32 %v2240_v44, %v1082_v31  ;;  %v1097_v47 = vshll.u32 %v2241_v46, %v1082_v31  ;;  %vm1100_vm4 = vcmp.lt.s32.totalorder %v1081_v30, 1  ;;  %vm1101_vm5 = vcmp.lt.s32.totalorder %v1081_v30, 2 }
 0x117   : > { %v1086_v49 = vshrl.u32 %v2238_v40, %v1083_v37  ;;  %v1089_v50 = vshrl.u32 %v2239_v42, %v1083_v37  ;;  %v1092_v51 = vshrl.u32 %v2240_v44, %v1083_v37  ;;  %v1084_v52 = vshrl.u32 %v2237_v38, %v1083_v37 }
 0x118   : > { %v1095_v54 = vshrl.u32 %v2241_v46, %v1083_v37  ;;  %v1098_v56 = vshrl.u32 %v2242_v55, %v1083_v37  ;;  %vm1102_vm6 = vcmp.lt.s32.totalorder %v1081_v30, 3  ;;  %vm1103_vm7 = vcmp.lt.s32.totalorder %v1081_v30, 4 }
 0x119   : > { %v1087_v57 = vor.u32 %v1086_v49, %v1085_v39  ;;  %v1090_v59 = vor.u32 %v1089_v50, %v1088_v41  ;;  %v1093_v60 = vor.u32 %v1092_v51, %v1091_v43  ;;  %v978_v2 = vand.u32 31, %v976_v61 }
 0x11a   : > { %v1096_v62 = vor.u32 %v1095_v54, %v1094_v45  ;;  %v1099_v63 = vor.u32 %v1098_v56, %v1097_v47  ;;  %v977_v21 = vshrl.u32 %v976_v61, 5 }
 0x11b   : > { %v1104_v3 = vsel %vm1100_vm4, %v1084_v52, %v1087_v57  ;;  %v1105_v5 = vsel %vm1103_vm7, %v1093_v60, 2102212464  ;;  %v1108_v6 = vsel %vm1100_vm4, %v1087_v57, %v1090_v59  ;;  %v1112_v7 = vsel %vm1100_vm4, %v1090_v59, %v1093_v60 }
 0x11c   : > { %v1106_v8 = vsel %vm1102_vm6, %v1090_v59, %v1105_v5  ;;  %v1109_v9 = vsel %vm1103_vm7, %v1096_v62, 920167782  ;;  %v1113_v11 = vsel %vm1103_vm7, %v1099_v63, 1326507024  ;;  %v979_v12 = vsub.s32 32, %v978_v2 }
 0x11d   : > { %v1107_v13 = vsel %vm1101_vm5, %v1104_v3, %v1106_v8  ;;  %v1110_v15 = vsel %vm1102_vm6, %v1093_v60, %v1109_v9  ;;  %v1114_v16 = vsel %vm1102_vm6, %v1096_v62, %v1113_v11  ;;  %v981_v22 = vshll.u32 %v2237_v38, %v978_v2 }
 0x11e   : > { %v1111_v18 = vsel %vm1101_vm5, %v1108_v6, %v1110_v15  ;;  %v1115_v20 = vsel %vm1101_vm5, %v1112_v7, %v1114_v16  ;;  %v1123_v27 = vmul.u32 %v2443_v33, %v1107_v13  ;;  %v982_v28 = vshrl.u32 %v2238_v40, %v979_v12 }
 0x11f   : > { %v2472_v23 = vmul.u32.u64.low %v2443_v33, %v1115_v20  ;;  %v2473_v24 = vmul.u32.u64.high %v2443_v33, %v1115_v20, %v2472_v23  ;;  %v2476_v25 = vmul.u32.u64.low %v2443_v33, %v1111_v18  ;;  %v2477_v26 = vmul.u32.u64.high %v2443_v33, %v1111_v18, %v2476_v25 }
 0x120   : > { %v984_v29 = vshll.u32 %v2238_v40, %v978_v2  ;;  %v985_v30 = vshrl.u32 %v2239_v42, %v979_v12  ;;  %v987_v31 = vshll.u32 %v2239_v42, %v978_v2  ;;  %v988_v32 = vshrl.u32 %v2240_v44, %v979_v12 }
 0x121   : > { %v990_v35 = vshll.u32 %v2240_v44, %v978_v2  ;;  %v991_v37 = vshrl.u32 %v2241_v46, %v979_v12  ;;  %v983_v39 = vor.u32 %v982_v28, %v981_v22  ;;  %v993_v43 = vshll.u32 %v2241_v46, %v978_v2 }
 0x122   : > { %v986_v41 = vor.u32 %v985_v30, %v984_v29  ;;  %v994_v33 = vshrl.u32 %v2242_v55, %v979_v12  ;;  %vm1125_vm8 = vc.u32 %v2473_v24, %v2476_v25  ;;  %v1126_v45 = vadd.s32 1, %v2477_v26 }
 0x123   : > { %v980_v47 = vshrl.u32 %v2237_v38, %v979_v12  ;;  %v989_v49 = vor.u32 %v988_v32, %v987_v31  ;;  %v992_v50 = vor.u32 %v991_v37, %v990_v35  ;;  %vm996_vm9 = vcmp.lt.s32.totalorder %v977_v21, 1 }
 0x124   : > { %v995_v51 = vor.u32 %v994_v33, %v993_v43  ;;  %vm997_vm10 = vcmp.lt.s32.totalorder %v977_v21, 2  ;;  %v1127_v52 = vsel %vm1125_vm8, %v1126_v45, %v2477_v26  ;;  %vm998_vm11 = vcmp.lt.s32.totalorder %v977_v21, 3 }
 0x125   : > { %vm999_vm12 = vcmp.lt.s32.totalorder %v977_v21, 4  ;;  %v1004_v54 = vsel %vm996_vm9, %v983_v39, %v986_v41  ;;  %v1128_v56 = vadd.s32 %v1127_v52, %v1123_v27  ;;  %v1008_v60 = vsel %vm996_vm9, %v986_v41, %v989_v49  ;;  %v2046_v21 = vpop.f32.mrf.mxu0 }
 0x126   : > { %v1001_v57 = vsel %vm999_vm12, %v989_v49, 2102212464  ;;  %v1005_v59 = vsel %vm999_vm12, %v992_v50, 920167782  ;;  %v1000_v61 = vsel %vm996_vm9, %v980_v47, %v983_v39  ;;  %v1009_v63 = vsel %vm999_vm12, %v995_v51, 1326507024 }
 0x127   : > { %v1006_v62 = vsel %vm998_vm11, %v989_v49, %v1005_v59  ;;  %v1286_v2 = vadd.s32 1, %v1900_v17  ;;  %v1129_v3 = vadd.s32 536870912, %v1128_v56  ;;  %v1002_v5 = vsel %vm998_vm11, %v986_v41, %v1001_v57 }
 0x128   : > { %v1007_v6 = vsel %vm997_vm10, %v1004_v54, %v1006_v62  ;;  %v1010_v7 = vsel %vm998_vm11, %v992_v50, %v1009_v63  ;;  %v1276_v12 = vand.u32 2147483647, %v2438_v19  ;;  %v1003_v17 = vsel %vm997_vm10, %v1000_v61, %v1002_v5 }
 0x129   : > { %v1011_v8 = vsel %vm997_vm10, %v1008_v60, %v1010_v7  ;;  %v2498_v9 = vmul.u32.u64.low %v2445_v34, %v1007_v6  ;;  %v2499_v11 = vmul.u32.u64.high %v2445_v34, %v1007_v6, %v2498_v9  ;;  %v1130_v13 = vshrl.u32 %v1129_v3, 30 }
 0x12a   : > { %v2504_v15 = vmul.u32.u64.low %v2445_v34, %v1011_v8  ;;  %v2505_v16 = vmul.u32.u64.high %v2445_v34, %v1011_v8, %v2504_v15  ;;  %vm1287_vm13 = vcmp.gt.s32.totalorder %v1286_v2, 0  ;;  %v2511_v26 = vand.u32 8388607, %v1276_v12 }
 0x12b   : > { %v1288_v18 = vsel %vm1287_vm13, %v1286_v2, 0  ;;  %v1131_v20 = vshll.u32 %v1130_v13, 30  ;;  %v1022_v23 = vadd.s32 1, %v2499_v11  ;;  %v1175_v27 = vand.u32 2139095040, %v2447_v36 }
 0x12c   : > { %v1290_v22 = vand.u32 31, %v1288_v18  ;;  %v1019_v29 = vmul.u32 %v2445_v34, %v1003_v17  ;;  %vm1021_vm14 = vc.u32 %v2505_v16, %v2498_v9  ;;  %v1284_v37 = vor.u32 8388608, %v2511_v26 }
 0x12d   : > { %v2514_v28 = vsub.s32 %v1128_v56, %v1131_v20  ;;  %v1023_v30 = vsel %vm1021_vm14, %v1022_v23, %v2499_v11  ;;  %v1172_v39 = vand.u32 2147483647, %v2447_v36  ;;  %v1176_v41 = vshrl.u32 %v1175_v27, 23 }
 0x12e   : > { %v1291_v31 = vsub.s32 32, %v1290_v22  ;;  %v1024_v35 = vadd.s32 %v1023_v30, %v1019_v29  ;;  %v2525_v43 = vadd.f32 %v2046_v21, %v2420_v48  ;;  %v1124_v49 = vadd.s32 %v2476_v25, %v2473_v24 }
 0x12f   : > { %v1134_v32 = vsub.s32 0, %v2514_v28  ;;  %v1289_v50 = vshrl.u32 %v1288_v18, 5  ;;  %v1299_v52 = vshll.u32 %v2239_v42, %v1290_v22  ;;  %v1154_v56 = vsub.s32 4, %v1130_v13 }
 0x130   : > { %v1025_v33 = vadd.s32 536870912, %v1024_v35  ;;  %v1294_v45 = vshrl.u32 %v2238_v40, %v1291_v31  ;;  %v1300_v47 = vshrl.u32 %v2240_v44, %v1291_v31  ;;  %v1297_v51 = vshrl.u32 %v2239_v42, %v1291_v31 }
 0x131   : > { %v1893_v34 = vmin.u32 %v1134_v32, %v2514_v28  ;;  %v1293_v48 = vshll.u32 %v2237_v38, %v1290_v22  ;;  %v1303_v57 = vshrl.u32 %v2241_v46, %v1291_v31  ;;  %v1296_v60 = vshll.u32 %v2238_v40, %v1290_v22 }
 0x132   : > { %v2536_v59 = vshrl.u32 %v1025_v33, 30  ;;  %v1301_v61 = vor.u32 %v1300_v47, %v1299_v52  ;;  %v1896_v62 = vadd.s32 4294967169, %v1176_v41  ;;  %v1302_v2 = vshll.u32 %v2240_v44, %v1290_v22 }
 0x133   : > { %v1136_v54 = vclz %v1893_v34  ;;  %v1295_v63 = vor.u32 %v1294_v45, %v1293_v48  ;;  %v1306_v3 = vshrl.u32 %v2242_v55, %v1291_v31  ;;  %v1298_v6 = vor.u32 %v1297_v51, %v1296_v60 }
 0x134   : > { %v1027_v5 = vshll.u32 %v2536_v59, 30  ;;  %v1305_v7 = vshll.u32 %v2241_v46, %v1290_v22  ;;  %vm1311_vm1 = vcmp.lt.s32.totalorder %v1289_v50, 4  ;;  %v1155_v8 = vsel %vm1070_vm15, %v1154_v56, %v1130_v13 }
 0x135   : > { %v1894_v25 = vadd.s32 4294967294, %v1136_v54  ;;  %v1304_v1 = vor.u32 %v1303_v57, %v1302_v2  ;;  %v1313_v11 = vsel %vm1311_vm1, %v1301_v61, 2102212464  ;;  %v1292_v18 = vshrl.u32 %v2237_v38, %v1291_v31 }
 0x136   : > { %v2552_v17 = vsub.s32 %v1024_v35, %v1027_v5  ;;  %v1307_v20 = vor.u32 %v1306_v3, %v1305_v7  ;;  %vm1308_vm3 = vcmp.lt.s32.totalorder %v1289_v50, 1  ;;  %vm1310_vm4 = vcmp.lt.s32.totalorder %v1289_v50, 3 }
 0x137   : > { %vm1895_vm2 = vcmp.lt.s32.totalorder %v1894_v25, 0  ;;  %v1312_v21 = vsel %vm1308_vm3, %v1292_v18, %v1295_v63  ;;  %v1314_v13 = vsel %vm1310_vm4, %v1298_v6, %v1313_v11  ;;  %vm966_vm5 = vcmp.lt.s32.totalorder %v2432_v10, 0 }
 0x138   : > { %v1139_v15 = vsel %vm1895_vm2, 0, %v1894_v25  ;;  %v1030_v29 = vsub.s32 0, %v2552_v17  ;;  %v1316_v35 = vsel %vm1308_vm3, %v1295_v63, %v1298_v6  ;;  %v1317_v41 = vsel %vm1311_vm1, %v1304_v1, 920167782 }
 0x139   : > { %v1140_v23 = vsub.s32 32, %v1139_v15  ;;  %v1144_v27 = vsub.s32 4294967266, %v1139_v15  ;;  %v1141_v22 = vshll.u32 %v2514_v28, %v1139_v15  ;;  %v1318_v34 = vsel %vm1310_vm4, %v1301_v61, %v1317_v41 }
 0x13a   : > { %v1889_v31 = vmin.u32 %v1030_v29, %v2552_v17  ;;  %v1320_v33 = vsel %vm1308_vm3, %v1298_v6, %v1301_v61  ;;  %v1321_v45 = vsel %vm1311_vm1, %v1307_v20, 1326507024  ;;  %vm1309_vm6 = vcmp.lt.s32.totalorder %v1289_v50, 2 }
 0x13b   : > { %v1142_v30 = vshrl.u32 %v1124_v49, %v1140_v23  ;;  %v1145_v32 = vadd.s32 127, %v1144_v27  ;;  %v1322_v51 = vsel %vm1310_vm4, %v1304_v1, %v1321_v45  ;;  %v1157_v49 = vsel %vm2541_vm0, 0, %v1155_v8  ;;  %v2060_v8 = vpop.f32.mrf.mxu1 }
 0x13c   : > { %vm2568_vm7 = vcmp.le.f32.partialorder %v964_v14, 0.7853982  ;;  %v1032_v54 = vclz %v1889_v31  ;;  %v1319_v56 = vsel %vm1309_vm6, %v1316_v35, %v1318_v34  ;;  %v1324_v48 = vshll.u32 %v1284_v37, 8 }
 0x13d   : > { %v1143_v28 = vor.u32 %v1142_v30, %v1141_v22  ;;  %v1146_v47 = vshll.u32 %v1145_v32, 23  ;;  %v1050_v60 = vsub.s32 4, %v2536_v59  ;;  %v1315_v61 = vsel %vm1309_vm6, %v1312_v21, %v1314_v13 }
 0x13e   : > { %v1323_v50 = vsel %vm1309_vm6, %v1320_v33, %v1322_v51  ;;  %v1890_v63 = vadd.s32 4294967294, %v1032_v54  ;;  %v2578_v14 = vmul.u32.u64.low %v1324_v48, %v1319_v56  ;;  %v2579_v6 = vmul.u32.u64.high %v1324_v48, %v1319_v56, %v2578_v14 }
 0x13f   : > { %v1147_v57 = vor.u32 4788187, %v1146_v47  ;;  %v1150_v25 = vcvt.s32.f32 %v1143_v28  ;;  %v2575_v2 = vmul.u32.u64.low %v1324_v48, %v1323_v50  ;;  %v2576_v3 = vmul.u32.u64.high %v1324_v48, %v1323_v50, %v2575_v2 }
 0x140   : > { %v1182_v7 = vadd.s32 1, %v1896_v62  ;;  %v1020_v26 = vadd.s32 %v2498_v9, %v2505_v16  ;;  %vm1891_vm8 = vcmp.lt.s32.totalorder %v1890_v63, 0  ;;  %v1179_v37 = vand.u32 8388607, %v1172_v39 }
 0x141   : > { %v1148_v5 = vand.u32 2147483647, %v1147_v57  ;;  %v2587_v1 = vadd.f32 %v2060_v8, %v2525_v43  ;;  %v1161_v15 = vadd.s32 3, %v1157_v49  ;;  %v1035_v18 = vsel %vm1891_vm8, 0, %v1890_v63 }
 0x142   : > { %vm1183_vm9 = vcmp.gt.s32.totalorder %v1182_v7, 0  ;;  %v1036_v20 = vsub.s32 32, %v1035_v18  ;;  %v1040_v23 = vsub.s32 4294967266, %v1035_v18  ;;  %v1051_v62 = vsel %vm966_vm5, %v1050_v60, %v2536_v59 }
 0x143   : > { %v1151_v11 = vmul.f32 %v1150_v25, %v1148_v5  ;;  %v1331_v27 = vmul.u32 %v1324_v48, %v1315_v61  ;;  %vm1333_vm10 = vc.u32 %v2576_v3, %v2578_v14  ;;  %v1334_v9 = vadd.s32 1, %v2579_v6 }
 0x144   : > { %v1184_v16 = vsel %vm1183_vm9, %v1182_v7, 0  ;;  %v1037_v43 = vshll.u32 %v2552_v17, %v1035_v18  ;;  %v1038_v29 = vshrl.u32 %v1020_v26, %v1036_v20  ;;  %v1041_v21 = vadd.s32 127, %v1040_v23 }
 0x145   : > { %v1152_v22 = vxor.u32 2147483648, %v1151_v11  ;;  %v1186_v13 = vand.u32 31, %v1184_v16  ;;  %v1053_v32 = vsel %vm2568_vm7, 0, %v1051_v62  ;;  %v1335_v59 = vsel %vm1333_vm10, %v1334_v9, %v2579_v6 }
 0x146   : > { %v1180_v35 = vor.u32 8388608, %v1179_v37  ;;  %v1039_v31 = vor.u32 %v1038_v29, %v1037_v43  ;;  %v1042_v34 = vshll.u32 %v1041_v21, 23  ;;  %v1336_v33 = vadd.s32 %v1335_v59, %v1331_v27 }
 0x147   : > { %v1153_v30 = vsel %vm1070_vm15, %v1152_v22, %v1151_v11  ;;  %v1187_v17 = vsub.s32 32, %v1186_v13  ;;  %v2604_v45 = vand.u32 3, %v1161_v15  ;;  %v2606_v49 = vadd.s32 3, %v1053_v32 }
 0x148   : > { %v1156_v41 = vsel %vm2541_vm0, %v2428_v4, %v1153_v30  ;;  %v1043_v28 = vor.u32 4788187, %v1042_v34  ;;  %v1337_v47 = vadd.s32 536870912, %v1336_v33  ;;  %v1046_v51 = vcvt.s32.f32 %v1039_v31 }
 0x149   : > { %2143 = vcosq.f32 %v1156_v41  ;;  %v2608_v54 = vshll.u32 %v1180_v35, 8  ;;  %v1487_v56 = vand.u32 2139095040, %v2587_v1  ;;  %v1190_v57 = vshrl.u32 %v2238_v40, %v1187_v17 }
 0x14a   : > { %2145 = vsinq.f32 %v1156_v41  ;;  %v1044_v48 = vand.u32 2147483647, %v1043_v28  ;;  %v2611_v24 = vshrl.u32 %v1337_v47, 30  ;;  %v1193_v60 = vshrl.u32 %v2239_v42, %v1187_v17 }
 0x14b   : > { %v2615_v61 = vshrl.u32 %v1184_v16, 5  ;;  %v1196_v50 = vshrl.u32 %v2240_v44, %v1187_v17  ;;  %v1198_v25 = vshll.u32 %v2240_v44, %v1186_v13  ;;  %v1199_v63 = vshrl.u32 %v2241_v46, %v1187_v17 }
 0x14c   : > { %v1047_v2 = vmul.f32 %v1046_v51, %v1044_v48  ;;  %v1339_v5 = vshll.u32 %v2611_v24, 30  ;;  %v1189_v6 = vshll.u32 %v2237_v38, %v1186_v13  ;;  %v1192_v7 = vshll.u32 %v2238_v40, %v1186_v13 }
 0x14d   : > { %v1195_v8 = vshll.u32 %v2239_v42, %v1186_v13  ;;  %v1200_v26 = vor.u32 %v1199_v63, %v1198_v25  ;;  %v1201_v37 = vshll.u32 %v2241_v46, %v1186_v13  ;;  %v1202_v11 = vshrl.u32 %v2242_v55, %v1187_v17 }
 0x14e   : > { %vm1167_vm11 = vcmp.eq.s32.totalorder %v2604_v45, 2  ;;  %v1048_v15 = vxor.u32 2147483648, %v1047_v2  ;;  %v2627_v18 = vsub.s32 %v1336_v33, %v1339_v5  ;;  %v1191_v20 = vor.u32 %v1190_v57, %v1189_v6 }
 0x14f   : > { %v1194_v23 = vor.u32 %v1193_v60, %v1192_v7  ;;  %vm1164_vm12 = vcmp.eq.s32.totalorder %v2604_v45, 0  ;;  %v1332_v62 = vadd.s32 %v2578_v14, %v2576_v3  ;;  %v1197_v27 = vor.u32 %v1196_v50, %v1195_v8 }
 0x150   : > { %v1203_v22 = vor.u32 %v1202_v11, %v1201_v37  ;;  %v1484_v9 = vand.u32 2147483647, %v2587_v1  ;;  %vm1163_vm13 = vcmp.lt.s32.totalorder %v2604_v45, 2  ;;  %v1049_v16 = vsel %vm966_vm5, %v1048_v15, %v1047_v2 }
 0x151   : > { %vm1278_vm14 = vcmp.lt.s32.totalorder %v2438_v19, 0  ;;  %v1342_v43 = vsub.s32 0, %v2627_v18  ;;  %vm1207_vm15 = vcmp.lt.s32.totalorder %v2615_v61, 4  ;;  %v1488_v29 = vshrl.u32 %v1487_v56, 23 }
 0x152   : > { %vm1160_vm0 = vweird.f32 %v2428_v4  ;;  %v1052_v3 = vsel %vm2568_vm7, %v2432_v10, %v1049_v16  ;;  %v1188_v14 = vshrl.u32 %v2237_v38, %v1187_v17  ;;  %vm1204_vm1 = vcmp.lt.s32.totalorder %v2615_v61, 1 }
 0x153   : > { %v1213_v21 = vsel %vm1207_vm15, %v1200_v26, 920167782  ;;  %2147 = vcosq.f32 %v1052_v3  ;;  %v1901_v13 = vmin.u32 %v1342_v43, %v2627_v18  ;;  %vm1206_vm2 = vcmp.lt.s32.totalorder %v2615_v61, 3 }
 0x154   : > { %v1212_v30 = vsel %vm1204_vm1, %v1191_v20, %v1194_v23  ;;  %2149 = vsinq.f32 %v1052_v3  ;;  %v1214_v52 = vsel %vm1206_vm2, %v1197_v27, %v1213_v21  ;;  %v1216_v32 = vsel %vm1204_vm1, %v1194_v23, %v1197_v27 }
 0x155   : > { %v1217_v59 = vsel %vm1207_vm15, %v1203_v22, 1326507024  ;;  %vm2660_vm3 = vcmp.le.f32.partialorder %v1276_v12, 0.7853982  ;;  %v1344_v31 = vclz %v1901_v13  ;;  %v1362_v34 = vsub.s32 4, %v2611_v24 }
 0x156   : > { %v2144_v35 = vpop.eup %2143  ;;  %vm1205_vm4 = vcmp.lt.s32.totalorder %v2615_v61, 2  ;;  %v1209_v33 = vsel %vm1207_vm15, %v1197_v27, 2102212464  ;;  %v1208_v47 = vsel %vm1204_vm1, %v1188_v14, %v1191_v20  ;;  %v1218_v51 = vsel %vm1206_vm2, %v1200_v26, %v1217_v59 }
 0x157   : > { %v2146_v17 = vpop.eup %2145  ;;  %v1168_v28 = vxor.u32 2147483648, %v2144_v35  ;;  %v1215_v12 = vsel %vm1205_vm4, %v1212_v30, %v1214_v52  ;;  %v1902_v48 = vadd.s32 4294967294, %v1344_v31  ;;  %v1219_v57 = vsel %vm1205_vm4, %v1216_v32, %v1218_v51  ;;  %v828_v51 = vpop.f32.mrf.mxu0 }
 0x158   : > { %v1165_v56 = vxor.u32 2147483648, %v2146_v17  ;;  %v1908_v60 = vadd.s32 4294967169, %v1488_v29  ;;  %v1210_v25 = vsel %vm1206_vm2, %v1194_v23, %v1209_v33  ;;  %v1363_v37 = vsel %vm1278_vm14, %v1362_v34, %v2611_v24 }
 0x159   : > { %v1169_v50 = vsel %vm1167_vm11, %v1168_v28, %v2146_v17  ;;  %v2683_v63 = vmul.u32.u64.low %v2608_v54, %v1219_v57  ;;  %v2684_v2 = vmul.u32.u64.high %v2608_v54, %v1219_v57, %v2683_v63  ;;  %vm1903_vm5 = vcmp.lt.s32.totalorder %v1902_v48, 0 }
 0x15a   : > { %v1166_v5 = vsel %vm1164_vm12, %v2144_v35, %v1165_v56  ;;  %v2689_v6 = vmul.u32.u64.low %v2608_v54, %v1215_v12  ;;  %v2690_v7 = vmul.u32.u64.high %v2608_v54, %v1215_v12, %v2689_v6  ;;  %v1347_v26 = vsel %vm1903_vm5, 0, %v1902_v48 }
 0x15b   : > { %v1170_v8 = vsel %vm1163_vm13, %v1166_v5, %v1169_v50  ;;  %v1494_v11 = vadd.s32 1, %v1908_v60  ;;  %v1348_v20 = vsub.s32 32, %v1347_v26  ;;  %v1352_v23 = vsub.s32 4294967266, %v1347_v26 }
 0x15c   : > { %v1171_v15 = vsel %vm1160_vm0, nan, %v1170_v8  ;;  %v1211_v27 = vsel %vm1205_vm4, %v1208_v47, %v1210_v25  ;;  %v1058_v45 = vand.u32 3, %v2606_v49  ;;  %v1349_v22 = vshll.u32 %v2627_v18, %v1347_v26 }
 0x15d   : > { %1797 = vst [vmem:[%s2702_s8 + $0x8] sm:$0xff] %v1171_v15  ;;  %vm1229_vm6 = vc.u32 %v2684_v2, %v2689_v6  ;;  %vm1495_vm7 = vcmp.gt.s32.totalorder %v1494_v11, 0  ;;  %v1350_v24 = vshrl.u32 %v1332_v62, %v1348_v20  ;;  %v1353_v4 = vadd.s32 127, %v1352_v23 }
 0x15e   : > { %v1230_v16 = vadd.s32 1, %v2690_v7  ;;  %v1496_v43 = vsel %vm1495_vm7, %v1494_v11, 0  ;;  %v1365_v61 = vsel %vm2660_vm3, 0, %v1363_v37  ;;  %v1227_v29 = vmul.u32 %v2608_v54, %v1211_v27  ;;  %v2049_v27 = vpop.f32.mrf.mxu0 }
 0x15f   : > { %v1491_v3 = vand.u32 8388607, %v1484_v9  ;;  %v1498_v49 = vand.u32 31, %v1496_v43  ;;  %vm1056_vm8 = vweird.f32 %v2432_v10  ;;  %v1351_v18 = vor.u32 %v1350_v24, %v1349_v22 }
 0x160   : > { %v1354_v14 = vshll.u32 %v1353_v4, 23  ;;  %v1231_v21 = vsel %vm1229_vm6, %v1230_v16, %v2690_v7  ;;  %v2148_v62 = vpop.eup %2147  ;;  %vm1059_vm9 = vcmp.lt.s32.totalorder %v1058_v45, 2  ;;  %vm1060_vm10 = vcmp.eq.s32.totalorder %v1058_v45, 0 }
 0x161   : > { %v1232_v13 = vadd.s32 %v1231_v21, %v1227_v29  ;;  %v1499_v30 = vsub.s32 32, %v1498_v49  ;;  %v2150_v52 = vpop.eup %2149  ;;  %vm1063_vm11 = vcmp.eq.s32.totalorder %v1058_v45, 2  ;;  %v1064_v32 = vxor.u32 2147483648, %v2148_v62 }
 0x162   : > { %v1355_v59 = vor.u32 4788187, %v1354_v14  ;;  %v2717_v54 = vadd.s32 3, %v1365_v61  ;;  %v1061_v35 = vxor.u32 2147483648, %v2150_v52  ;;  %v1492_v34 = vor.u32 8388608, %v1491_v3 }
 0x163   : > { %v1233_v31 = vadd.s32 536870912, %v1232_v13  ;;  %v2719_v33 = vshrl.u32 %v1496_v43, 5  ;;  %v1065_v17 = vsel %vm1063_vm11, %v1064_v32, %v2150_v52  ;;  %v1358_v47 = vcvt.s32.f32 %v1351_v18 }
 0x164   : > { %v1356_v28 = vand.u32 2147483647, %v1355_v59  ;;  %v1501_v12 = vshll.u32 %v2237_v38, %v1498_v49  ;;  %v1062_v56 = vsel %vm1060_vm10, %v2148_v62, %v1061_v35  ;;  %v1502_v57 = vshrl.u32 %v2238_v40, %v1499_v30 }
 0x165   : > { %v1234_v48 = vshrl.u32 %v1233_v31, 30  ;;  %v1508_v60 = vshrl.u32 %v2240_v44, %v1499_v30  ;;  %v1066_v50 = vsel %vm1059_vm9, %v1062_v56, %v1065_v17  ;;  %v1504_v63 = vshll.u32 %v2238_v40, %v1498_v49 }
 0x166   : > { %v1359_v25 = vmul.f32 %v1358_v47, %v1356_v28  ;;  %v1505_v5 = vshrl.u32 %v2239_v42, %v1499_v30  ;;  %v1067_v7 = vsel %vm1056_vm8, nan, %v1066_v50  ;;  %v1507_v26 = vshll.u32 %v2239_v42, %v1498_v49 }
 0x167   : > { %v1235_v8 = vshll.u32 %v1234_v48, 30  ;;  %v1511_v37 = vshrl.u32 %v2241_v46, %v1499_v30  ;;  %1796 = vst [vmem:[%s2702_s8] sm:$0xff] %v1067_v7  ;;  %vm1174_vm12 = vcmp.lt.s32.totalorder %v2447_v36, 0  ;;  %v1510_v15 = vshll.u32 %v2240_v44, %v1498_v49 }
 0x168   : > { %v1360_v11 = vxor.u32 2147483648, %v1359_v25  ;;  %v1513_v20 = vshll.u32 %v2241_v46, %v1498_v49  ;;  %v1514_v23 = vshrl.u32 %v2242_v55, %v1499_v30  ;;  %v1503_v10 = vor.u32 %v1502_v57, %v1501_v12 }
 0x169   : > { %v2737_v45 = vsub.s32 %v1232_v13, %v1235_v8  ;;  %v1509_v22 = vor.u32 %v1508_v60, %v1507_v26  ;;  %v2739_v24 = vshll.u32 %v1492_v34, 8  ;;  %v1506_v16 = vor.u32 %v1505_v5, %v1504_v63 }
 0x16a   : > { %v1361_v4 = vsel %vm1278_vm14, %v1360_v11, %v1359_v25  ;;  %v1512_v43 = vor.u32 %v1511_v37, %v1510_v15  ;;  %v1515_v61 = vor.u32 %v1514_v23, %v1513_v20  ;;  %v829_v49 = vadd.f32 %v828_v51, %v2422_v53 }
 0x16b   : > { %v1364_v29 = vsel %vm2660_vm3, %v2438_v19, %v1361_v4  ;;  %v1238_v3 = vsub.s32 0, %v2737_v45  ;;  %v847_v18 = vadd.f32 %v2049_v27, %v2424_v58  ;;  %v1258_v14 = vsub.s32 4, %v1234_v48  ;;  %v942_v58 = vpop.f32.mrf.mxu1 }
 0x16c   : > { %2151 = vcosq.f32 %v1364_v29  ;;  %v1500_v21 = vshrl.u32 %v2237_v38, %v1499_v30  ;;  %vm1519_vm13 = vcmp.lt.s32.totalorder %v2719_v33, 4  ;;  %vm1516_vm14 = vcmp.lt.s32.totalorder %v2719_v33, 1 }
 0x16d   : > { %2153 = vsinq.f32 %v1364_v29  ;;  %v1897_v62 = vmin.u32 %v1238_v3, %v2737_v45  ;;  %v1521_v13 = vsel %vm1519_vm13, %v1509_v22, 2102212464  ;;  %v1524_v41 = vsel %vm1516_vm14, %v1503_v10, %v1506_v16  ;;  %v2063_v63 = vpop.f32.mrf.mxu1 }
 0x16e   : > { %v1525_v52 = vsel %vm1519_vm13, %v1512_v43, 920167782  ;;  %v1528_v32 = vsel %vm1516_vm14, %v1506_v16, %v1509_v22  ;;  %v1529_v59 = vsel %vm1519_vm13, %v1515_v61, 1326507024  ;;  %vm1517_vm15 = vcmp.lt.s32.totalorder %v2719_v33, 2 }
 0x16f   : > { %v1240_v35 = vclz %v1897_v62  ;;  %vm1518_vm0 = vcmp.lt.s32.totalorder %v2719_v33, 3  ;;  %v1520_v53 = vsel %vm1516_vm14, %v1500_v21, %v1503_v10  ;;  %v2755_v17 = vadd.f32 %v942_v58, %v829_v49 }
 0x170   : > { %v1522_v30 = vsel %vm1518_vm0, %v1506_v16, %v1521_v13  ;;  %v1526_v31 = vsel %vm1518_vm0, %v1509_v22, %v1525_v52  ;;  %v1530_v34 = vsel %vm1518_vm0, %v1512_v43, %v1529_v59  ;;  %v1259_v47 = vsel %vm1174_vm12, %v1258_v14, %v1234_v48 }
 0x171   : > { %v1898_v28 = vadd.s32 4294967294, %v1240_v35  ;;  %v1527_v12 = vsel %vm1517_vm15, %v1524_v41, %v1526_v31  ;;  %v1531_v51 = vsel %vm1517_vm15, %v1528_v32, %v1530_v34  ;;  %v1523_v50 = vsel %vm1517_vm15, %v1520_v53, %v1522_v30 }
 0x172   : > { %v2760_v56 = vmul.u32.u64.low %v2739_v24, %v1531_v51  ;;  %v2761_v57 = vmul.u32.u64.high %v2739_v24, %v1531_v51, %v2760_v56  ;;  %v2764_v60 = vmul.u32.u64.low %v2739_v24, %v1527_v12  ;;  %v2765_v33 = vmul.u32.u64.high %v2739_v24, %v1527_v12, %v2764_v60 }
 0x173   : > { %vm1899_vm1 = vcmp.lt.s32.totalorder %v1898_v28, 0  ;;  %v1383_v25 = vand.u32 2139095040, %v2755_v17  ;;  %v1370_v5 = vand.u32 3, %v2717_v54  ;;  %vm2772_vm2 = vcmp.le.f32.partialorder %v1172_v39, 0.7853982 }
 0x174   : > { %v1243_v7 = vsel %vm1899_vm1, 0, %v1898_v28  ;;  %v2776_v8 = vadd.f32 %v2063_v63, %v847_v18  ;;  %v1228_v26 = vadd.s32 %v2689_v6, %v2684_v2  ;;  %v1261_v15 = vsel %vm2772_vm2, 0, %v1259_v47 }
 0x175   : > { %v1244_v37 = vsub.s32 32, %v1243_v7  ;;  %v1248_v11 = vsub.s32 4294967266, %v1243_v7  ;;  %v1539_v20 = vmul.u32 %v2739_v24, %v1523_v50  ;;  %vm1541_vm3 = vc.u32 %v2761_v57, %v2764_v60 }
 0x176   : > { %v1542_v39 = vadd.s32 1, %v2765_v33  ;;  %v1384_v54 = vshrl.u32 %v1383_v25, 23  ;;  %v1245_v23 = vshll.u32 %v2737_v45, %v1243_v7  ;;  %v1380_v22 = vand.u32 2147483647, %v2755_v17 }
 0x177   : > { %v1246_v27 = vshrl.u32 %v1228_v26, %v1244_v37  ;;  %v1249_v10 = vadd.s32 127, %v1248_v11  ;;  %vm1371_vm4 = vcmp.lt.s32.totalorder %v1370_v5, 2  ;;  %v1695_v4 = vand.u32 2139095040, %v2776_v8 }
 0x178   : > { %v1543_v2 = vsel %vm1541_vm3, %v1542_v39, %v2765_v33  ;;  %v1904_v6 = vadd.s32 4294967169, %v1384_v54  ;;  %vm1372_vm5 = vcmp.eq.s32.totalorder %v1370_v5, 0  ;;  %vm1375_vm6 = vcmp.eq.s32.totalorder %v1370_v5, 2 }
 0x179   : > { %v2152_v16 = vpop.eup %2151  ;;  %v1247_v24 = vor.u32 %v1246_v27, %v1245_v23  ;;  %v1250_v43 = vshll.u32 %v1249_v10, 23  ;;  %v1544_v61 = vadd.s32 %v1543_v2, %v1539_v20  ;;  %v1265_v49 = vadd.s32 3, %v1261_v15 }
 0x17a   : > { %v2154_v29 = vpop.eup %2153  ;;  %v1376_v3 = vxor.u32 2147483648, %v2152_v16  ;;  %v1390_v45 = vadd.s32 1, %v1904_v6  ;;  %v1387_v62 = vand.u32 8388607, %v1380_v22  ;;  %v1696_v52 = vshrl.u32 %v1695_v4, 23 }
 0x17b   : > { %v1373_v18 = vxor.u32 2147483648, %v2154_v29  ;;  %v1251_v14 = vor.u32 4788187, %v1250_v43  ;;  %v1545_v21 = vadd.s32 536870912, %v1544_v61  ;;  %v1254_v41 = vcvt.s32.f32 %v1247_v24 }
 0x17c   : > { %v1377_v13 = vsel %vm1375_vm6, %v1376_v3, %v2154_v29  ;;  %vm1391_vm7 = vcmp.gt.s32.totalorder %v1390_v45, 0  ;;  %vm1368_vm8 = vweird.f32 %v2438_v19  ;;  %v2799_v47 = vand.u32 3, %v1265_v49 }
 0x17d   : > { %v1374_v32 = vsel %vm1372_vm5, %v2152_v16, %v1373_v18  ;;  %v1252_v59 = vand.u32 2147483647, %v1251_v14  ;;  %v2793_v35 = vshrl.u32 %v1545_v21, 30  ;;  %v1392_v53 = vsel %vm1391_vm7, %v1390_v45, 0 }
 0x17e   : > { %v1378_v58 = vsel %vm1371_vm4, %v1374_v32, %v1377_v13  ;;  %v1394_v30 = vand.u32 31, %v1392_v53  ;;  %v1388_v12 = vor.u32 8388608, %v1387_v62  ;;  %v1692_v56 = vand.u32 2147483647, %v2776_v8 }
 0x17f   : > { %v1379_v31 = vsel %vm1368_vm8, nan, %v1378_v58  ;;  %v1255_v34 = vmul.f32 %v1254_v41, %v1252_v59  ;;  %v1547_v28 = vshll.u32 %v2793_v35, 30  ;;  %v2804_v25 = vshrl.u32 %v1392_v53, 5 }
 0x180   : > { %1799 = vst [vmem:[%s2702_s8 + $0x18] sm:$0xff] %v1379_v31  ;;  %v1395_v51 = vsub.s32 32, %v1394_v30  ;;  %v1916_v19 = vadd.s32 4294967169, %v1696_v52  ;;  %v1397_v63 = vshll.u32 %v2237_v38, %v1394_v30  ;;  %v1400_v7 = vshll.u32 %v2238_v40, %v1394_v30 }
 0x181   : > { %v1256_v33 = vxor.u32 2147483648, %v1255_v34  ;;  %v2802_v50 = vsub.s32 %v1544_v61, %v1547_v28  ;;  %v1403_v15 = vshll.u32 %v2239_v42, %v1394_v30  ;;  %v1406_v23 = vshll.u32 %v2240_v44, %v1394_v30 }
 0x182   : > { %v1398_v5 = vshrl.u32 %v2238_v40, %v1395_v51  ;;  %v1401_v26 = vshrl.u32 %v2239_v42, %v1395_v51  ;;  %v1404_v20 = vshrl.u32 %v2240_v44, %v1395_v51  ;;  %v1407_v27 = vshrl.u32 %v2241_v46, %v1395_v51 }
 0x183   : > { %v1257_v37 = vsel %vm1174_vm12, %v1256_v33, %v1255_v34  ;;  %v1550_v11 = vsub.s32 0, %v2802_v50  ;;  %v1409_v16 = vshll.u32 %v2241_v46, %v1394_v30  ;;  %v1410_v24 = vshrl.u32 %v2242_v55, %v1395_v51 }
 0x184   : > { %v1260_v39 = vsel %vm2772_vm2, %v2447_v36, %v1257_v37  ;;  %v1399_v54 = vor.u32 %v1398_v5, %v1397_v63  ;;  %v1402_v2 = vor.u32 %v1401_v26, %v1400_v7  ;;  %v1405_v6 = vor.u32 %v1404_v20, %v1403_v15 }
 0x185   : > { %2155 = vcosq.f32 %v1260_v39  ;;  %v1909_v10 = vmin.u32 %v1550_v11, %v2802_v50  ;;  %v1408_v4 = vor.u32 %v1407_v27, %v1406_v23  ;;  %v1540_v48 = vadd.s32 %v2764_v60, %v2761_v57 }
 0x186   : > { %2157 = vsinq.f32 %v1260_v39  ;;  %v2825_v61 = vshll.u32 %v1388_v12, 8  ;;  %v2829_v29 = vand.u32 8388607, %v1692_v56  ;;  %vm1486_vm9 = vcmp.lt.s32.totalorder %v2587_v1, 0  ;;  %v840_v39 = vpop.f32.mrf.mxu0 }
 0x187   : > { %v1552_v43 = vclz %v1909_v10  ;;  %v1396_v3 = vshrl.u32 %v2237_v38, %v1395_v51  ;;  %v1411_v49 = vor.u32 %v1410_v24, %v1409_v16  ;;  %vm1412_vm10 = vcmp.lt.s32.totalorder %v2804_v25, 1 }
 0x188   : > { %v1702_v45 = vadd.s32 1, %v1916_v19  ;;  %vm1414_vm11 = vcmp.lt.s32.totalorder %v2804_v25, 3  ;;  %vm1415_vm12 = vcmp.lt.s32.totalorder %v2804_v25, 4  ;;  %v1420_v57 = vsel %vm1412_vm10, %v1399_v54, %v1402_v2 }
 0x189   : > { %v1910_v18 = vadd.s32 4294967294, %v1552_v43  ;;  %v1417_v60 = vsel %vm1415_vm12, %v1405_v6, 2102212464  ;;  %v1421_v14 = vsel %vm1415_vm12, %v1408_v4, 920167782  ;;  %v1424_v21 = vsel %vm1412_vm10, %v1402_v2, %v1405_v6 }
 0x18a   : > { %v1425_v62 = vsel %vm1415_vm12, %v1411_v49, 1326507024  ;;  %vm2842_vm13 = vcmp.le.f32.partialorder %v1484_v9, 0.7853982  ;;  %vm1413_vm15 = vcmp.lt.s32.totalorder %v2804_v25, 2  ;;  %v1422_v41 = vsel %vm1414_vm11, %v1405_v6, %v1421_v14 }
 0x18b   : > { %vm1911_vm14 = vcmp.lt.s32.totalorder %v1910_v18, 0  ;;  %v1426_v52 = vsel %vm1414_vm11, %v1408_v4, %v1425_v62  ;;  %v1570_v59 = vsub.s32 4, %v2793_v35  ;;  %v1423_v53 = vsel %vm1413_vm15, %v1420_v57, %v1422_v41 }
 0x18c   : > { %v1555_v32 = vsel %vm1911_vm14, 0, %v1910_v18  ;;  %v1427_v9 = vsel %vm1413_vm15, %v1424_v21, %v1426_v52  ;;  %v1416_v31 = vsel %vm1412_vm10, %v1396_v3, %v1399_v54  ;;  %v1418_v34 = vsel %vm1414_vm11, %v1402_v2, %v1417_v60 }
 0x18d   : > { %v1556_v58 = vsub.s32 32, %v1555_v32  ;;  %v1560_v30 = vsub.s32 4294967266, %v1555_v32  ;;  %v2861_v28 = vmul.u32.u64.low %v2825_v61, %v1427_v9  ;;  %v2862_v12 = vmul.u32.u64.high %v2825_v61, %v1427_v9, %v2861_v28 }
 0x18e   : > { %v2865_v51 = vmul.u32.u64.low %v2825_v61, %v1423_v53  ;;  %v2866_v33 = vmul.u32.u64.high %v2825_v61, %v1423_v53, %v2865_v51  ;;  %vm1264_vm0 = vweird.f32 %v2447_v36  ;;  %v1557_v19 = vshll.u32 %v2802_v50, %v1555_v32 }
 0x18f   : > { %v1558_v63 = vshrl.u32 %v1540_v48, %v1556_v58  ;;  %v1561_v5 = vadd.s32 127, %v1560_v30  ;;  %vm1703_vm1 = vcmp.gt.s32.totalorder %v1702_v45, 0  ;;  %vm1267_vm2 = vcmp.lt.s32.totalorder %v2799_v47, 2 }
 0x190   : > { %vm1268_vm3 = vcmp.eq.s32.totalorder %v2799_v47, 0  ;;  %v1419_v7 = vsel %vm1413_vm15, %v1416_v31, %v1418_v34  ;;  %v1704_v26 = vsel %vm1703_vm1, %v1702_v45, 0  ;;  %v1571_v15 = vsel %vm1486_vm9, %v1570_v59, %v2793_v35 }
 0x191   : > { %v1559_v37 = vor.u32 %v1558_v63, %v1557_v19  ;;  %v1562_v11 = vshll.u32 %v1561_v5, 23  ;;  %v1706_v20 = vand.u32 31, %v1704_v26  ;;  %vm1271_vm4 = vcmp.eq.s32.totalorder %v2799_v47, 2 }
 0x192   : > { %v2156_v50 = vpop.eup %2155  ;;  %vm1437_vm5 = vc.u32 %v2862_v12, %v2865_v51  ;;  %v1438_v54 = vadd.s32 1, %v2866_v33  ;;  %v1700_v25 = vor.u32 8388608, %v2829_v29  ;;  %v1435_v2 = vmul.u32 %v2825_v61, %v1419_v7 }
 0x193   : > { %v2158_v23 = vpop.eup %2157  ;;  %v1272_v27 = vxor.u32 2147483648, %v2156_v50  ;;  %v1563_v10 = vor.u32 4788187, %v1562_v11  ;;  %v1707_v6 = vsub.s32 32, %v1706_v20  ;;  %v1573_v35 = vsel %vm2842_vm13, 0, %v1571_v15 }
 0x194   : > { %v1269_v4 = vxor.u32 2147483648, %v2158_v23  ;;  %v1439_v16 = vsel %vm1437_vm5, %v1438_v54, %v2866_v33  ;;  %v841_v24 = vadd.f32 %v840_v39, %v2426_v0  ;;  %v1566_v3 = vcvt.s32.f32 %v1559_v37 }
 0x195   : > { %v1273_v48 = vsel %vm1271_vm4, %v1272_v27, %v2158_v23  ;;  %v1564_v43 = vand.u32 2147483647, %v1563_v10  ;;  %v1440_v49 = vadd.s32 %v1439_v16, %v1435_v2  ;;  %v1705_v45 = vshrl.u32 %v1704_v26, 5  ;;  %v954_v26 = vpop.f32.mrf.mxu1 }
 0x196   : > { %v1270_v29 = vsel %vm1268_vm3, %v2156_v50, %v1269_v4  ;;  %v1710_v61 = vshrl.u32 %v2238_v40, %v1707_v6  ;;  %v1713_v18 = vshrl.u32 %v2239_v42, %v1707_v6  ;;  %v1716_v0 = vshrl.u32 %v2240_v44, %v1707_v6 }
 0x197   : > { %v1274_v57 = vsel %vm1267_vm2, %v1270_v29, %v1273_v48  ;;  %v1567_v60 = vmul.f32 %v1566_v3, %v1564_v43  ;;  %v1441_v14 = vadd.s32 536870912, %v1440_v49  ;;  %v1709_v62 = vshll.u32 %v2237_v38, %v1706_v20 }
 0x198   : > { %v1275_v21 = vsel %vm1264_vm0, nan, %v1274_v57  ;;  %v1712_v41 = vshll.u32 %v2238_v40, %v1706_v20  ;;  %v1715_v52 = vshll.u32 %v2239_v42, %v1706_v20  ;;  %v1718_v47 = vshll.u32 %v2240_v44, %v1706_v20 }
 0x199   : > { %1798 = vst [vmem:[%s2702_s8 + $0x10] sm:$0xff] %v1275_v21  ;;  %v1568_v32 = vxor.u32 2147483648, %v1567_v60  ;;  %v2901_v59 = vshrl.u32 %v1441_v14, 30  ;;  %v1719_v53 = vshrl.u32 %v2241_v46, %v1707_v6  ;;  %v1711_v9 = vor.u32 %v1710_v61, %v1709_v62 }
 0x19a   : > { %v1714_v58 = vor.u32 %v1713_v18, %v1712_v41  ;;  %v1721_v30 = vshll.u32 %v2241_v46, %v1706_v20  ;;  %v1722_v36 = vshrl.u32 %v2242_v55, %v1707_v6  ;;  %v1717_v28 = vor.u32 %v1716_v0, %v1715_v52 }
 0x19b   : > { %v1569_v31 = vsel %vm1486_vm9, %v1568_v32, %v1567_v60  ;;  %v1443_v34 = vshll.u32 %v2901_v59, 30  ;;  %v1720_v33 = vor.u32 %v1719_v53, %v1718_v47  ;;  %v1577_v63 = vadd.s32 3, %v1573_v35 }
 0x19c   : > { %v1572_v19 = vsel %vm2842_vm13, %v2587_v1, %v1569_v31  ;;  %v1723_v5 = vor.u32 %v1722_v36, %v1721_v30  ;;  %v1740_v7 = vshll.u32 %v1700_v25, 8  ;;  %vm1724_vm6 = vcmp.lt.s32.totalorder %v1705_v45, 1 }
 0x19d   : > { %2159 = vcosq.f32 %v1572_v19  ;;  %v1444_v37 = vsub.s32 %v1440_v49, %v1443_v34  ;;  %v2913_v11 = vadd.f32 %v954_v26, %v841_v24  ;;  %v1708_v15 = vshrl.u32 %v2237_v38, %v1707_v6 }
 0x19e   : > { %2161 = vsinq.f32 %v1572_v19  ;;  %vm1727_vm7 = vcmp.lt.s32.totalorder %v1705_v45, 4  ;;  %v1732_v20 = vsel %vm1724_vm6, %v1711_v9, %v1714_v58  ;;  %vm1726_vm8 = vcmp.lt.s32.totalorder %v1705_v45, 3 }
 0x19f   : > { %v1446_v39 = vsub.s32 0, %v1444_v37  ;;  %v1729_v50 = vsel %vm1727_vm7, %v1717_v28, 2102212464  ;;  %v1733_v54 = vsel %vm1727_vm7, %v1720_v33, 920167782  ;;  %vm1725_vm9 = vcmp.lt.s32.totalorder %v1705_v45, 2 }
 0x1a0   : > { %v1734_v13 = vsel %vm1726_vm8, %v1717_v28, %v1733_v54  ;;  %v1736_v23 = vsel %vm1724_vm6, %v1714_v58, %v1717_v28  ;;  %v1737_v27 = vsel %vm1727_vm7, %v1723_v5, 1326507024  ;;  %v1728_v10 = vsel %vm1724_vm6, %v1708_v15, %v1711_v9 }
 0x1a1   : > { %v1905_v25 = vmin.u32 %v1446_v39, %v1444_v37  ;;  %v1735_v2 = vsel %vm1725_vm9, %v1732_v20, %v1734_v13  ;;  %v1738_v4 = vsel %vm1726_vm8, %v1720_v33, %v1737_v27  ;;  %v1730_v35 = vsel %vm1726_vm8, %v1714_v58, %v1729_v50 }
 0x1a2   : > { %v1739_v16 = vsel %vm1725_vm9, %v1736_v23, %v1738_v4  ;;  %v2916_v24 = vmul.u32.u64.low %v1740_v7, %v1735_v2  ;;  %v2917_v48 = vmul.u32.u64.high %v1740_v7, %v1735_v2, %v2916_v24  ;;  %v1731_v29 = vsel %vm1725_vm9, %v1728_v10, %v1730_v35 }
 0x1a3   : > { %v1448_v6 = vclz %v1905_v25  ;;  %v2920_v43 = vmul.u32.u64.low %v1740_v7, %v1739_v16  ;;  %v2921_v3 = vmul.u32.u64.high %v1740_v7, %v1739_v16, %v2920_v43  ;;  %v1591_v45 = vand.u32 2139095040, %v2913_v11 }
 0x1a4   : > { %v1578_v61 = vand.u32 3, %v1577_v63  ;;  %v1750_v18 = vadd.s32 1, %v2917_v48  ;;  %v1747_v14 = vmul.u32 %v1740_v7, %v1731_v29  ;;  %v1436_v0 = vadd.s32 %v2865_v51, %v2862_v12 }
 0x1a5   : > { %v1906_v49 = vadd.s32 4294967294, %v1448_v6  ;;  %v1592_v57 = vshrl.u32 %v1591_v45, 23  ;;  %vm1749_vm11 = vc.u32 %v2921_v3, %v2916_v24  ;;  %vm1576_vm12 = vweird.f32 %v2587_v1 }
 0x1a6   : > { %v1751_v41 = vsel %vm1749_vm11, %v1750_v18, %v2917_v48  ;;  %vm1583_vm13 = vcmp.eq.s32.totalorder %v1578_v61, 2  ;;  %v1466_v34 = vsub.s32 4, %v2901_v59  ;;  %vm1580_vm14 = vcmp.eq.s32.totalorder %v1578_v61, 0 }
 0x1a7   : > { %vm1907_vm10 = vcmp.lt.s32.totalorder %v1906_v49, 0  ;;  %v1752_v32 = vadd.s32 %v1751_v41, %v1747_v14  ;;  %v1912_v47 = vadd.s32 4294967169, %v1592_v57  ;;  %vm1579_vm15 = vcmp.lt.s32.totalorder %v1578_v61, 2 }
 0x1a8   : > { %v1451_v60 = vsel %vm1907_vm10, 0, %v1906_v49  ;;  %vm1382_vm1 = vcmp.lt.s32.totalorder %v2755_v17, 0  ;;  %v1588_v50 = vand.u32 2147483647, %v2913_v11  ;;  %vm2945_vm2 = vcmp.le.f32.partialorder %v1380_v22, 0.7853982 }
 0x1a9   : > { %v1452_v21 = vsub.s32 32, %v1451_v60  ;;  %v1456_v62 = vsub.s32 4294967266, %v1451_v60  ;;  %v1453_v58 = vshll.u32 %v1444_v37, %v1451_v60  ;;  %v1753_v28 = vadd.s32 536870912, %v1752_v32 }
 0x1aa   : > { %v2160_v52 = vpop.eup %2159  ;;  %v1598_v12 = vadd.s32 1, %v1912_v47  ;;  %v1467_v20 = vsel %vm1382_vm1, %v1466_v34, %v2901_v59  ;;  %v1595_v4 = vand.u32 8388607, %v1588_v50  ;;  %v1748_v47 = vadd.s32 %v2916_v24, %v2921_v3 }
 0x1ab   : > { %v2162_v53 = vpop.eup %2161  ;;  %v1584_v9 = vxor.u32 2147483648, %v2160_v52  ;;  %v1454_v30 = vshrl.u32 %v1436_v0, %v1452_v21  ;;  %v1457_v36 = vadd.s32 127, %v1456_v62  ;;  %v2932_v5 = vshrl.u32 %v1753_v28, 30 }
 0x1ac   : > { %v1581_v31 = vxor.u32 2147483648, %v2162_v53  ;;  %vm1599_vm0 = vcmp.gt.s32.totalorder %v1598_v12, 0  ;;  %v1469_v10 = vsel %vm2945_vm2, 0, %v1467_v20  ;;  %v1596_v62 = vor.u32 8388608, %v1595_v4 }
 0x1ad   : > { %v1585_v51 = vsel %vm1583_vm13, %v1584_v9, %v2162_v53  ;;  %v1455_v33 = vor.u32 %v1454_v30, %v1453_v58  ;;  %v1458_v19 = vshll.u32 %v1457_v36, 23  ;;  %v1600_v37 = vsel %vm1599_vm0, %v1598_v12, 0 }
 0x1ae   : > { %v1582_v63 = vsel %vm1580_vm14, %v2160_v52, %v1581_v31  ;;  %v1755_v39 = vshll.u32 %v2932_v5, 30  ;;  %v1602_v23 = vand.u32 31, %v1600_v37  ;;  %v1601_v35 = vshrl.u32 %v1600_v37, 5 }
 0x1af   : > { %v1586_v7 = vsel %vm1579_vm15, %v1582_v63, %v1585_v51  ;;  %v1459_v26 = vor.u32 4788187, %v1458_v19  ;;  %v1462_v13 = vcvt.s32.f32 %v1455_v33  ;;  %v1473_v0 = vadd.s32 3, %v1469_v10 }
 0x1b0   : > { %v1587_v15 = vsel %vm1576_vm12, nan, %v1586_v7  ;;  %v1756_v1 = vsub.s32 %v1752_v32, %v1755_v39  ;;  %v1603_v59 = vsub.s32 32, %v1602_v23  ;;  %v1605_v16 = vshll.u32 %v2237_v38, %v1602_v23 }
 0x1b1   : > { %1801 = vst [vmem:[%s2702_s8 + $0x28] sm:$0xff] %v1587_v15  ;;  %v1460_v54 = vand.u32 2147483647, %v1459_v26  ;;  %v1608_v22 = vshll.u32 %v2238_v40, %v1602_v23  ;;  %v1611_v29 = vshll.u32 %v2239_v42, %v1602_v23  ;;  %v1614_v61 = vshll.u32 %v2240_v44, %v1602_v23 }
 0x1b2   : > { %v1758_v2 = vsub.s32 0, %v1756_v1  ;;  %v1606_v6 = vshrl.u32 %v2238_v40, %v1603_v59  ;;  %v1609_v43 = vshrl.u32 %v2239_v42, %v1603_v59  ;;  %v1612_v45 = vshrl.u32 %v2240_v44, %v1603_v59 }
 0x1b3   : > { %v1463_v25 = vmul.f32 %v1462_v13, %v1460_v54  ;;  %v1615_v14 = vshrl.u32 %v2241_v46, %v1603_v59  ;;  %vm1620_vm3 = vcmp.lt.s32.totalorder %v1601_v35, 1  ;;  %v1617_v52 = vshll.u32 %v2241_v46, %v1602_v23 }
 0x1b4   : > { %v1917_v49 = vmin.u32 %v1758_v2, %v1756_v1  ;;  %v1607_v57 = vor.u32 %v1606_v6, %v1605_v16  ;;  %v1610_v60 = vor.u32 %v1609_v43, %v1608_v22  ;;  %v1613_v42 = vor.u32 %v1612_v45, %v1611_v29 }
 0x1b5   : > { %v1464_v48 = vxor.u32 2147483648, %v1463_v25  ;;  %v1616_v41 = vor.u32 %v1615_v14, %v1614_v61  ;;  %v1618_v32 = vshrl.u32 %v2242_v55, %v1603_v59  ;;  %vm1622_vm4 = vcmp.lt.s32.totalorder %v1601_v35, 3 }
 0x1b6   : > { %v1760_v21 = vclz %v1917_v49  ;;  %vm1623_vm5 = vcmp.lt.s32.totalorder %v1601_v35, 4  ;;  %v1628_v53 = vsel %vm1620_vm3, %v1607_v57, %v1610_v60  ;;  %v1604_v31 = vshrl.u32 %v2237_v38, %v1603_v59 }
 0x1b7   : > { %v1465_v18 = vsel %vm1382_vm1, %v1464_v48, %v1463_v25  ;;  %v1619_v9 = vor.u32 %v1618_v32, %v1617_v52  ;;  %v1625_v58 = vsel %vm1623_vm5, %v1613_v42, 2102212464  ;;  %v1629_v30 = vsel %vm1623_vm5, %v1616_v41, 920167782 }
 0x1b8   : > { %v1468_v40 = vsel %vm2945_vm2, %v2755_v17, %v1465_v18  ;;  %v1918_v44 = vadd.s32 4294967294, %v1760_v21  ;;  %v1630_v46 = vsel %vm1622_vm4, %v1613_v42, %v1629_v30  ;;  %v1636_v34 = vshll.u32 %v1596_v62, 8 }
 0x1b9   : > { %2163 = vcosq.f32 %v1468_v40  ;;  %vm1621_vm7 = vcmp.lt.s32.totalorder %v1601_v35, 2  ;;  %v1632_v24 = vsel %vm1620_vm3, %v1610_v60, %v1613_v42  ;;  %v1624_v3 = vsel %vm1620_vm3, %v1604_v31, %v1607_v57 }
 0x1ba   : > { %2165 = vsinq.f32 %v1468_v40  ;;  %vm1919_vm6 = vcmp.lt.s32.totalorder %v1918_v44, 0  ;;  %v1626_v12 = vsel %vm1622_vm4, %v1610_v60, %v1625_v58  ;;  %v1631_v51 = vsel %vm1621_vm7, %v1628_v53, %v1630_v46 }
 0x1bb   : > { %v1763_v36 = vsel %vm1919_vm6, 0, %v1918_v44  ;;  %v1633_v33 = vsel %vm1623_vm5, %v1619_v9, 1326507024  ;;  %v2980_v37 = vmul.u32.u64.low %v1636_v34, %v1631_v51  ;;  %v2981_v15 = vmul.u32.u64.high %v1636_v34, %v1631_v51, %v2980_v37 }
 0x1bc   : > { %v1764_v55 = vsub.s32 32, %v1763_v36  ;;  %v1768_v28 = vsub.s32 4294967266, %v1763_v36  ;;  %v1765_v19 = vshll.u32 %v1756_v1, %v1763_v36  ;;  %v1634_v38 = vsel %vm1622_vm4, %v1616_v41, %v1633_v33 }
 0x1bd   : > { %v1635_v26 = vsel %vm1621_vm7, %v1632_v24, %v1634_v38  ;;  %v1627_v23 = vsel %vm1621_vm7, %v1624_v3, %v1626_v12  ;;  %v1474_v27 = vand.u32 3, %v1473_v0  ;;  %v1646_v10 = vadd.s32 1, %v2981_v15 }
 0x1be   : > { %v1766_v63 = vshrl.u32 %v1748_v47, %v1764_v55  ;;  %v1769_v7 = vadd.s32 127, %v1768_v28  ;;  %v2983_v54 = vmul.u32.u64.low %v1636_v34, %v1635_v26  ;;  %v2984_v13 = vmul.u32.u64.high %v1636_v34, %v1635_v26, %v2983_v54 }
 0x1bf   : > { %v1643_v4 = vmul.u32 %v1636_v34, %v1627_v23  ;;  %vm1479_vm9 = vcmp.eq.s32.totalorder %v1474_v27, 2  ;;  %vm1476_vm10 = vcmp.eq.s32.totalorder %v1474_v27, 0  ;;  %vm1475_vm11 = vcmp.lt.s32.totalorder %v1474_v27, 2 }
 0x1c0   : > { %v1767_v20 = vor.u32 %v1766_v63, %v1765_v19  ;;  %v1770_v39 = vshll.u32 %v1769_v7, 23  ;;  %vm1645_vm8 = vc.u32 %v2984_v13, %v2980_v37  ;;  %vm1472_vm12 = vweird.f32 %v2755_v17 }
 0x1c1   : > { %v1647_v48 = vsel %vm1645_vm8, %v1646_v10, %v2981_v15  ;;  %vm1694_vm13 = vcmp.lt.s32.totalorder %v2776_v8, 0  ;;  %v1778_v57 = vsub.s32 4, %v2932_v5  ;;  %vm1693_vm14 = vcmp.le.f32.partialorder %v1692_v56, 0.7853982 }
 0x1c2   : > { %v1771_v25 = vor.u32 4788187, %v1770_v39  ;;  %v1774_v2 = vcvt.s32.f32 %v1767_v20  ;;  %v1648_v43 = vadd.s32 %v1647_v48, %v1643_v4  ;;  %v1644_v36 = vadd.s32 %v2980_v37, %v2984_v13 }
 0x1c3   : > { %v1779_v62 = vsel %vm1694_vm13, %v1778_v57, %v2932_v5  ;;  %vm1784_vm3 = vweird.f32 %v2776_v8  ;;  %vm1590_vm4 = vcmp.lt.s32.totalorder %v2913_v11, 0  ;;  %vm1589_vm5 = vcmp.le.f32.partialorder %v1588_v50, 0.7853982 }
 0x1c4   : > { %v1772_v1 = vand.u32 2147483647, %v1771_v25  ;;  %v1649_v61 = vadd.s32 536870912, %v1648_v43  ;;  %v1781_v42 = vsel %vm1693_vm14, 0, %v1779_v62 }
 0x1c5   : > { %v1785_v52 = vadd.s32 3, %v1781_v42 }
 0x1c6   : > { %v2164_v59 = vpop.eup %2163  ;;  %v1775_v22 = vmul.f32 %v1774_v2, %v1772_v1  ;;  %v1650_v40 = vshrl.u32 %v1649_v61, 30 }
 0x1c7   : > { %v2166_v35 = vpop.eup %2165  ;;  %v1480_v16 = vxor.u32 2147483648, %v2164_v59  ;;  %v1786_v53 = vand.u32 3, %v1785_v52 }
 0x1c8   : > { %v1477_v6 = vxor.u32 2147483648, %v2166_v35  ;;  %v1776_v45 = vxor.u32 2147483648, %v1775_v22  ;;  %v1651_v21 = vshll.u32 %v1650_v40, 30  ;;  %v1674_v15 = vsub.s32 4, %v1650_v40 }
 0x1c9   : > { %v1481_v49 = vsel %vm1479_vm9, %v1480_v16, %v2166_v35  ;;  %vm1788_vm0 = vcmp.eq.s32.totalorder %v1786_v53, 0  ;;  %vm1791_vm1 = vcmp.eq.s32.totalorder %v1786_v53, 2  ;;  %vm1787_vm2 = vcmp.lt.s32.totalorder %v1786_v53, 2 }
 0x1ca   : > { %v1478_v29 = vsel %vm1476_vm10, %v2164_v59, %v1477_v6  ;;  %v1777_v14 = vsel %vm1694_vm13, %v1776_v45, %v1775_v22  ;;  %v1652_v17 = vsub.s32 %v1648_v43, %v1651_v21  ;;  %v1675_v39 = vsel %vm1590_vm4, %v1674_v15, %v1650_v40 }
 0x1cb   : > { %v1482_v18 = vsel %vm1475_vm11, %v1478_v29, %v1481_v49  ;;  %v1780_v0 = vsel %vm1693_vm14, %v2776_v8, %v1777_v14  ;;  %v1677_v54 = vsel %vm1589_vm5, 0, %v1675_v39  ;;  %vm1680_vm9 = vweird.f32 %v2913_v11 }
 0x1cc   : > { %v1483_v60 = vsel %vm1472_vm12, nan, %v1482_v18  ;;  %2167 = vcosq.f32 %v1780_v0  ;;  %v1654_v41 = vsub.s32 0, %v1652_v17  ;;  %v1681_v13 = vadd.s32 3, %v1677_v54 }
 0x1cd   : > { %1800 = vst [vmem:[%s2702_s8 + $0x20] sm:$0xff] %v1483_v60  ;;  %2169 = vsinq.f32 %v1780_v0 }
 0x1ce   : > { %v1913_v44 = vmin.u32 %v1654_v41, %v1652_v17  ;;  %v1682_v23 = vand.u32 3, %v1681_v13 }
 0x1d0   : > { %v1656_v32 = vclz %v1913_v44  ;;  %vm1687_vm6 = vcmp.eq.s32.totalorder %v1682_v23, 2  ;;  %vm1684_vm7 = vcmp.eq.s32.totalorder %v1682_v23, 0  ;;  %vm1683_vm8 = vcmp.lt.s32.totalorder %v1682_v23, 2 }
 0x1d2   : > { %v1914_v47 = vadd.s32 4294967294, %v1656_v32 }
 0x1d4   : > { %vm1915_vm15 = vcmp.lt.s32.totalorder %v1914_v47, 0 }
 0x1d5   : > { %v1659_v9 = vsel %vm1915_vm15, 0, %v1914_v47 }
 0x1d6   : > { %v1660_v31 = vsub.s32 32, %v1659_v9  ;;  %v1664_v46 = vsub.s32 4294967266, %v1659_v9  ;;  %v1661_v55 = vshll.u32 %v1652_v17, %v1659_v9 }
 0x1d8   : > { %v1662_v28 = vshrl.u32 %v1644_v36, %v1660_v31  ;;  %v1665_v24 = vadd.s32 127, %v1664_v46 }
 0x1d9   : > { %v2168_v56 = vpop.eup %2167 }
 0x1da   : > { %v2170_v58 = vpop.eup %2169  ;;  %v1792_v30 = vxor.u32 2147483648, %v2168_v56  ;;  %v1663_v51 = vor.u32 %v1662_v28, %v1661_v55  ;;  %v1666_v33 = vshll.u32 %v1665_v24, 23 }
 0x1db   : > { %v1789_v5 = vxor.u32 2147483648, %v2170_v58 }
 0x1dc   : > { %v1793_v34 = vsel %vm1791_vm1, %v1792_v30, %v2170_v58  ;;  %v1667_v63 = vor.u32 4788187, %v1666_v33  ;;  %v1670_v38 = vcvt.s32.f32 %v1663_v51 }
 0x1dd   : > { %v1790_v3 = vsel %vm1788_vm0, %v2168_v56, %v1789_v5 }
 0x1de   : > { %v1794_v12 = vsel %vm1787_vm2, %v1790_v3, %v1793_v34  ;;  %v1668_v7 = vand.u32 2147483647, %v1667_v63 }
 0x1df   : > { %v1795_v19 = vsel %vm1784_vm3, nan, %v1794_v12 }
 0x1e0   : > { %1803 = vst [vmem:[%s2702_s8 + $0x38] sm:$0xff] %v1795_v19  ;;  %v1671_v26 = vmul.f32 %v1670_v38, %v1668_v7 }
 0x1e2   : > { %v1672_v37 = vxor.u32 2147483648, %v1671_v26 }
 0x1e4   : > { %v1673_v20 = vsel %vm1590_vm4, %v1672_v37, %v1671_v26 }
 0x1e5   : > { %v1676_v8 = vsel %vm1589_vm5, %v2913_v11, %v1673_v20 }
 0x1e6   : > { %2171 = vcosq.f32 %v1676_v8 }
 0x1e7   : > { %2173 = vsinq.f32 %v1676_v8 }
 0x1f3   : > { %v2172_v27 = vpop.eup %2171 }
 0x1f4   : > { %v2174_v25 = vpop.eup %2173  ;;  %v1688_v10 = vxor.u32 2147483648, %v2172_v27 }
 0x1f5   : > { %v1685_v59 = vxor.u32 2147483648, %v2174_v25 }
 0x1f6   : > { %v1689_v50 = vsel %vm1687_vm6, %v1688_v10, %v2174_v25 }
 0x1f7   : > { %v1686_v1 = vsel %vm1684_vm7, %v2172_v27, %v1685_v59 }
 0x1f8   : > { %v1690_v2 = vsel %vm1683_vm8, %v1686_v1, %v1689_v50 }
 0x1f9   : > { %v1691_v4 = vsel %vm1680_vm9, nan, %v1690_v2 }
 0x1fa   : > { %1802 = vst [vmem:[%s2702_s8 + $0x30] sm:$0xff] %v1691_v4 }
 0x1fb   : > { %2188 = shalt.err (!%p2185_p3)
}
 0x1fc   : > { %s2189_s27 = scalar_lea.hbm %s3009_s19, 1024  ;;  %s2193_s30 = scalar_lea.hbm %s3060_s3, 2048 }
 0x1fd   : > { %p2190_p4 = scmp.ne.s32.totalorder %s3009_s19, %s2189_s27  ;;  %p2194_p9 = scmp.lt.s32.totalorder %s3009_s19, %s3060_s3 }
 0x1fe   : > { %p2195_p10 = scmp.lt.s32.totalorder %s2193_s30, %s2189_s27 }
 0x1ff   : > { %p2191_p7 = pnand %p2190_p4, %p2304_p5 }
 0x200   : > { %p2196_p11 = por %p2195_p10, %p2194_p9 }
 0x201   : > { %p2192_p8 = pneg %p2191_p7 }
 0x203   : > { %p2197_p12 = pnand %p2196_p11, %p2192_p8 }
 0x205   : > { %2200 = shalt.err (!%p2197_p12)
}
 0x206   : > { %s2244_s6 = smov 128   ;;  %s2245_s7 = smov 8  }
 0x207   : > { %2096 = dma.vmem_to_hbm [thread:$0]  (%p2304_p5), %s3011_s10, 1024, %s3009_s19, %s3017_s16, %s2244_s6, %s2244_s6, %s2245_s7  }
 0x208 PF: > { %p2102_p13 = scmp.ge.s32.totalorder %s2235_s15, 2  ;;  %s1833_s8 = sand.u32 1, %s2223_s12  }
 0x209   : > { %s1834_s9 = scalar_lea.sflag [#allocation3], %s1833_s8 }
 0x20a   : > { %p2099_p0 = pnand %p2102_p13, %p2308_p6 }
 0x20c   : > { %p2100_p1 = pneg %p2099_p0 }
 0x20e   : > { %2218 = dma.done.wait (%p2100_p1), %s1834_s9, 1024  }
 0x20f   : > { %2220 = vsyncadd (%p2100_p1), %s1834_s9, 4294966272  ;;  %p13_p2 = scmp.ge.s32.totalorder %s2291_s18, 4   ;;  %s3075_s12 = smov %s2227_s13 }
 0x210   : > { %s3076_s13 = smov %s2231_s14  ;;  %s3077_s14 = smov %s2302_s21 }
 0x211   : > { %s3078_s15 = smov %s2291_s18  ;;  %15 = sbr.rel (!%p13_p2) target bundleno = 3 (0x3), region = 67 }
 0x216   :  { %1839 = vsyncpa [#allocation3], 1 }
 0x217   :  { %1841 = vsyncpa [#allocation3 + $0x1], 1 }

</bundles_post_ra>
